<compile_context>
chip_gen: v6e
topology: v6e:2x2x1
jax: 0.10.0
libtpu: 0.0.40
codegen_flags: <defaults>
</compile_context>

<pallas_src>
import jax
import jax.numpy as jnp
from jax import lax
from jax.experimental import pallas as pl
from jax.experimental.pallas import tpu as pltpu


def basic_block_kernel(xf_ref,                      # (H*W, C)   f32  input (flat)
                       w1_ref,                      # (9*C, C)   bf16 conv1 w (bn1 scale folded)
                       b1_ref,                      # (1, C)     f32  bn1 bias
                       w2_ref,                      # (9*C, C)   bf16 conv2 w (bn2 scale folded)
                       b2_ref,                      # (1, C)     f32  bn2 bias
                       fc1wt_ref,                   # (hid, C)   f32  SE fc1 weight (transposed)
                       fc1b_ref,                    # (hid, 1)   f32  SE fc1 bias
                       fc2w_ref,                    # (hid, C)   f32  SE fc2 weight
                       fc2b_ref,                    # (1, C)     f32  SE fc2 bias
                       o_ref,                       # (H*W, C)   f32  output (flat)
                       yp_ref,                      # (H+2, W+2, C) f32 shared zero-halo pad buf
                       p_ref):                      # (H*W, 9*C) f32 im2col patch matrix
    HW, C = o_ref.shape
    Hp, Wp, _ = yp_ref.shape
    H, W = Hp - 2, Wp - 2

    def fill_patches():
        # Gather the 3x3 neighborhoods of yp_ref into p_ref as (H*W, 9*C) so
        # each conv becomes a single K = 9*C MXU matmul.
        for dh in range(3):
            for dw in range(3):
                k = (dh * 3 + dw) * C
                p_ref[:, k:k + C] = (
                    yp_ref[dh:dh + H, dw:dw + W, :].reshape(HW, C))

    x = xf_ref[...]                                           # (H*W, C) f32, shortcut operand

    # ---- conv1 (+ folded bn1 scale): one K=9*C bf16 MXU dot, then bias + relu
    yp_ref[...] = jnp.zeros_like(yp_ref)                      # small bf-of-a-buffer zero; halo stays 0
    yp_ref[1:H + 1, 1:W + 1, :] = x.reshape(H, W, C)
    fill_patches()
    acc1 = jnp.dot(p_ref[...].astype(jnp.bfloat16), w1_ref[...],
                   preferred_element_type=jnp.float32)        # (H*W, C) f32
    out1 = jnp.maximum(acc1 + b1_ref[...], 0.0)

    # ---- conv2 (+ folded bn2 scale): halo of yp_ref is still zero, rewrite interior only
    yp_ref[1:H + 1, 1:W + 1, :] = out1.reshape(H, W, C)
    fill_patches()
    acc2 = jnp.dot(p_ref[...].astype(jnp.bfloat16), w2_ref[...],
                   preferred_element_type=jnp.float32)        # (H*W, C) f32, pre-bias

    # ---- squeeze-excite gate, VPU/EUP only (shapes far too small for the MXU)
    # mean(acc2 + b2) == mean(acc2) + b2 since the bias is constant over space.
    pooled = jnp.mean(acc2, axis=0, keepdims=True) + b2_ref[...]            # (1, C)
    h = jnp.maximum(jnp.sum(pooled * fc1wt_ref[...], axis=-1, keepdims=True)
                    + fc1b_ref[...], 0.0)                                    # (hid, 1)
    gate = jax.nn.sigmoid(jnp.sum(h * fc2w_ref[...], axis=0, keepdims=True)
                          + fc2b_ref[...])                                   # (1, C)

    # ---- bn2 bias + SE scale + identity shortcut + relu
    o_ref[...] = jnp.maximum((acc2 + b2_ref[...]) * gate + x, 0.0)


def basic_block(x, params):
    N, H, W, Cin = x.shape
    C = params["w1"].shape[-1]
    hid = params["fc1w"].shape[-1]
    assert Cin == C, "only the identity-shortcut BasicBlock config is supported"
    # TODO(synk): downsampling (strided) shortcut conv path not implemented.

    # Fold BN scales into the conv weights (per-output-channel), cast to bf16.
    w1f = (params["w1"] * params["s1"][0]).reshape(9 * Cin, C).astype(jnp.bfloat16)
    w2f = (params["w2"] * params["s2"][0]).reshape(9 * C, C).astype(jnp.bfloat16)
    b1, b2 = params["b1"], params["b2"]                       # (1, C) f32
    fc1wt = params["fc1w"].T                                  # (hid, C)
    fc1b = params["fc1b"].T                                   # (hid, 1)
    fc2w, fc2b = params["fc2w"], params["fc2b"]               # (hid, C), (1, C)

    xf = x.reshape(N, H * W, Cin)                             # free, row-major

    def full_spec(a):
        return pl.BlockSpec(a.shape, lambda n, nd=a.ndim: (0,) * nd)

    grid_spec = pltpu.PrefetchScalarGridSpec(
        num_scalar_prefetch=0,
        grid=(N,),
        in_specs=[
            pl.BlockSpec((None, H * W, Cin), lambda n: (n, 0, 0)),
            full_spec(w1f), full_spec(b1), full_spec(w2f), full_spec(b2),
            full_spec(fc1wt), full_spec(fc1b), full_spec(fc2w), full_spec(fc2b),
        ],
        out_specs=pl.BlockSpec((None, H * W, C), lambda n: (n, 0, 0)),
        scratch_shapes=[
            pltpu.VMEM((H + 2, W + 2, C), jnp.float32),       # shared zero-halo pad buffer
            pltpu.VMEM((H * W, 9 * C), jnp.float32),          # im2col patch matrix
        ],
    )

    flops_per_img = 2 * H * W * 9 * C * (Cin + C) + 2 * (C * hid + hid * C) + 6 * H * W * C
    bytes_accessed = (xf.size + N * H * W * C) * 4 + (w1f.size + w2f.size) * 2 + \
                     (b1.size + b2.size + fc1wt.size + fc1b.size + fc2w.size + fc2b.size) * 4

    out = pl.pallas_call(
        basic_block_kernel,
        out_shape=jax.ShapeDtypeStruct((N, H * W, C), jnp.float32),
        grid_spec=grid_spec,
        compiler_params=pltpu.CompilerParams(
            dimension_semantics=("parallel",),                # v7x: one image per TensorCore
            vmem_limit_bytes=32 * 1024 * 1024,
        ),
        cost_estimate=pl.CostEstimate(
            flops=N * flops_per_img,
            transcendentals=N * (hid + 2 * C),
            bytes_accessed=bytes_accessed,
        ),
    )(xf, w1f, b1, w2f, b2, fc1wt, fc1b, fc2w, fc2b)
    return out.reshape(N, H, W, C)


def ref_forward(x, p):
    """Pure-JAX f32 reference (same semantics as the PyTorch module, eval-mode BN)."""
    dn = ("NHWC", "HWIO", "NHWC")
    out = lax.conv_general_dilated(x, p["w1"], (1, 1), "SAME", dimension_numbers=dn)
    out = jnp.maximum(out * p["s1"][0] + p["b1"][0], 0.0)
    out = lax.conv_general_dilated(out, p["w2"], (1, 1), "SAME", dimension_numbers=dn)
    out = out * p["s2"][0] + p["b2"][0]
    w = jnp.mean(out, axis=(1, 2))                                  # avg_pool2d(out, H)
    w = jnp.maximum(w @ p["fc1w"] + p["fc1b"][0], 0.0)
    w = jax.nn.sigmoid(w @ p["fc2w"] + p["fc2b"][0])
    out = out * w[:, None, None, :]
    out = out + x                                                   # identity shortcut
    return jnp.maximum(out, 0.0)


def make_params(key, in_planes, planes):
    ks = jax.random.split(key, 12)
    eps = 1e-5

    def fold_bn(gamma, beta, mean, var):
        scale = gamma / jnp.sqrt(var + eps)
        bias = beta - mean * scale
        return scale[None, :], bias[None, :]

    w1 = 0.1 * jax.random.normal(ks[0], (3, 3, in_planes, planes), jnp.float32)
    w2 = 0.1 * jax.random.normal(ks[1], (3, 3, planes, planes), jnp.float32)

    g1 = 1.0 + 0.1 * jax.random.normal(ks[2], (planes,), jnp.float32)
    be1 = 0.1 * jax.random.normal(ks[3], (planes,), jnp.float32)
    m1 = 0.1 * jax.random.normal(ks[4], (planes,), jnp.float32)
    v1 = 1.0 + 0.1 * jax.random.uniform(ks[5], (planes,), jnp.float32)
    s1, b1 = fold_bn(g1, be1, m1, v1)

    g2 = 1.0 + 0.1 * jax.random.normal(ks[6], (planes,), jnp.float32)
    be2 = 0.1 * jax.random.normal(ks[7], (planes,), jnp.float32)
    m2 = 0.1 * jax.random.normal(ks[8], (planes,), jnp.float32)
    v2 = 1.0 + 0.1 * jax.random.uniform(ks[9], (planes,), jnp.float32)
    s2, b2 = fold_bn(g2, be2, m2, v2)

    hid = planes // 16
    fc1w = 0.3 * jax.random.normal(ks[10], (planes, hid), jnp.float32)
    fc1b = jnp.zeros((1, hid), jnp.float32)
    fc2w = 0.3 * jax.random.normal(ks[11], (hid, planes), jnp.float32)
    fc2b = jnp.zeros((1, planes), jnp.float32)

    return dict(w1=w1, s1=s1, b1=b1, w2=w2, s2=s2, b2=b2,
                fc1w=fc1w, fc1b=fc1b, fc2w=fc2w, fc2b=fc2b)


if __name__ == "__main__":
    # BasicBlock(in_planes=32, planes=32, stride=1)  -> identity shortcut
    N, H, W, C = 2, 8, 8, 32
    key = jax.random.PRNGKey(0)
    kx, kp = jax.random.split(key)

    x = jax.random.normal(kx, (N, H, W, C), jnp.float32)   # NHWC
    params = make_params(kp, C, C)

    out = jax.block_until_ready(basic_block(x, params))
    ref = ref_forward(x, params)

    assert out.shape == (N, H, W, C)
    max_err = jnp.max(jnp.abs(out - ref))
    # Tolerance sized for bf16 MXU operands (K = 288 accumulations) vs. the
    # pure-f32 reference; real bugs produce O(0.1 - 10) errors.
    assert jnp.allclose(out, ref, rtol=3e-2, atol=3e-2), f"max err {max_err}"

    print("KERNEL_OK")
</pallas_src>

<mosaic_0001>
module attributes {stable_mosaic.version = 11 : i64} {
  func.func @basic_block_kernel(%arg0: i32, %arg1: memref<1x64x32xf32, #tpu.memory_space<vmem>>, %arg2: memref<288x32xbf16, #tpu.memory_space<vmem>>, %arg3: memref<1x32xf32, #tpu.memory_space<vmem>>, %arg4: memref<288x32xbf16, #tpu.memory_space<vmem>>, %arg5: memref<1x32xf32, #tpu.memory_space<vmem>>, %arg6: memref<2x32xf32, #tpu.memory_space<vmem>>, %arg7: memref<2x1xf32, #tpu.memory_space<vmem>>, %arg8: memref<2x32xf32, #tpu.memory_space<vmem>>, %arg9: memref<1x32xf32, #tpu.memory_space<vmem>>, %arg10: memref<1x64x32xf32, #tpu.memory_space<vmem>>, %arg11: memref<10x10x32xf32, #tpu.memory_space<vmem>>, %arg12: memref<64x288xf32, #tpu.memory_space<vmem>>) attributes {dimension_semantics = [#tpu.dimension_semantics<parallel>], iteration_bounds = array<i64: 2>, scalar_prefetch = 0 : i64, scratch_operands = 2 : i64, tpu.core_type = #tpu.core_type<tc>, window_params = [{transform_indices = @transform_0, window_bounds = array<i64: 1, 64, 32>}, {pipeline_mode = #tpu.pipeline_mode<synchronous>, transform_indices = @transform_1, window_bounds = array<i64: 288, 32>}, {pipeline_mode = #tpu.pipeline_mode<synchronous>, transform_indices = @transform_2, window_bounds = array<i64: 1, 32>}, {pipeline_mode = #tpu.pipeline_mode<synchronous>, transform_indices = @transform_3, window_bounds = array<i64: 288, 32>}, {pipeline_mode = #tpu.pipeline_mode<synchronous>, transform_indices = @transform_4, window_bounds = array<i64: 1, 32>}, {pipeline_mode = #tpu.pipeline_mode<synchronous>, transform_indices = @transform_5, window_bounds = array<i64: 2, 32>}, {pipeline_mode = #tpu.pipeline_mode<synchronous>, transform_indices = @transform_6, window_bounds = array<i64: 2, 1>}, {pipeline_mode = #tpu.pipeline_mode<synchronous>, transform_indices = @transform_7, window_bounds = array<i64: 2, 32>}, {pipeline_mode = #tpu.pipeline_mode<synchronous>, transform_indices = @transform_8, window_bounds = array<i64: 1, 32>}, {transform_indices = @transform_9, window_bounds = array<i64: 1, 64, 32>}]} {
    %c0 = arith.constant 0 : index
    %c0_0 = arith.constant 0 : index
    %c0_1 = arith.constant 0 : index
    %0 = vector.load %arg1[%c0, %c0_0, %c0_1] : memref<1x64x32xf32, #tpu.memory_space<vmem>>, vector<1x64x32xf32>
    %1 = vector.shape_cast %0 : vector<1x64x32xf32> to vector<64x32xf32>
    %cst = arith.constant 0.000000e+00 : f32
    %2 = vector.broadcast %cst : f32 to vector<10x10x32xf32>
    %c0_2 = arith.constant 0 : index
    %c0_3 = arith.constant 0 : index
    %c0_4 = arith.constant 0 : index
    %3 = vector.load %arg11[%c0_2, %c0_3, %c0_4] : memref<10x10x32xf32, #tpu.memory_space<vmem>>, vector<10x10x32xf32>
    tpu.vector_store %arg11[%c0_2, %c0_3, %c0_4], %2 {strides = array<i32>} : memref<10x10x32xf32, #tpu.memory_space<vmem>>, vector<10x10x32xf32>,
    %4 = vector.shape_cast %1 : vector<64x32xf32> to vector<8x8x32xf32>
    %c1 = arith.constant 1 : index
    %c1_5 = arith.constant 1 : index
    %c0_6 = arith.constant 0 : index
    %5 = vector.load %arg11[%c1, %c1_5, %c0_6] : memref<10x10x32xf32, #tpu.memory_space<vmem>>, vector<8x8x32xf32>
    tpu.vector_store %arg11[%c1, %c1_5, %c0_6], %4 {strides = array<i32>} : memref<10x10x32xf32, #tpu.memory_space<vmem>>, vector<8x8x32xf32>,
    %c0_7 = arith.constant 0 : index
    %c0_8 = arith.constant 0 : index
    %c0_9 = arith.constant 0 : index
    %6 = vector.load %arg11[%c0_7, %c0_8, %c0_9] : memref<10x10x32xf32, #tpu.memory_space<vmem>>, vector<8x8x32xf32>
    %7 = vector.shape_cast %6 : vector<8x8x32xf32> to vector<64x32xf32>
    %c0_10 = arith.constant 0 : index
    %c0_11 = arith.constant 0 : index
    %8 = vector.load %arg12[%c0_10, %c0_11] : memref<64x288xf32, #tpu.memory_space<vmem>>, vector<64x32xf32>
    tpu.vector_store %arg12[%c0_10, %c0_11], %7 {strides = array<i32>} : memref<64x288xf32, #tpu.memory_space<vmem>>, vector<64x32xf32>,
    %c0_12 = arith.constant 0 : index
    %c1_13 = arith.constant 1 : index
    %c0_14 = arith.constant 0 : index
    %9 = vector.load %arg11[%c0_12, %c1_13, %c0_14] : memref<10x10x32xf32, #tpu.memory_space<vmem>>, vector<8x8x32xf32>
    %10 = vector.shape_cast %9 : vector<8x8x32xf32> to vector<64x32xf32>
    %c0_15 = arith.constant 0 : index
    %c32 = arith.constant 32 : index
    %11 = vector.load %arg12[%c0_15, %c32] : memref<64x288xf32, #tpu.memory_space<vmem>>, vector<64x32xf32>
    tpu.vector_store %arg12[%c0_15, %c32], %10 {strides = array<i32>} : memref<64x288xf32, #tpu.memory_space<vmem>>, vector<64x32xf32>,
    %c0_16 = arith.constant 0 : index
    %c2 = arith.constant 2 : index
    %c0_17 = arith.constant 0 : index
    %12 = vector.load %arg11[%c0_16, %c2, %c0_17] : memref<10x10x32xf32, #tpu.memory_space<vmem>>, vector<8x8x32xf32>
    %13 = vector.shape_cast %12 : vector<8x8x32xf32> to vector<64x32xf32>
    %c0_18 = arith.constant 0 : index
    %c64 = arith.constant 64 : index
    %14 = vector.load %arg12[%c0_18, %c64] : memref<64x288xf32, #tpu.memory_space<vmem>>, vector<64x32xf32>
    tpu.vector_store %arg12[%c0_18, %c64], %13 {strides = array<i32>} : memref<64x288xf32, #tpu.memory_space<vmem>>, vector<64x32xf32>,
    %c1_19 = arith.constant 1 : index
    %c0_20 = arith.constant 0 : index
    %c0_21 = arith.constant 0 : index
    %15 = vector.load %arg11[%c1_19, %c0_20, %c0_21] : memref<10x10x32xf32, #tpu.memory_space<vmem>>, vector<8x8x32xf32>
    %16 = vector.shape_cast %15 : vector<8x8x32xf32> to vector<64x32xf32>
    %c0_22 = arith.constant 0 : index
    %c96 = arith.constant 96 : index
    %17 = vector.load %arg12[%c0_22, %c96] : memref<64x288xf32, #tpu.memory_space<vmem>>, vector<64x32xf32>
    tpu.vector_store %arg12[%c0_22, %c96], %16 {strides = array<i32>} : memref<64x288xf32, #tpu.memory_space<vmem>>, vector<64x32xf32>,
    %c1_23 = arith.constant 1 : index
    %c1_24 = arith.constant 1 : index
    %c0_25 = arith.constant 0 : index
    %18 = vector.load %arg11[%c1_23, %c1_24, %c0_25] : memref<10x10x32xf32, #tpu.memory_space<vmem>>, vector<8x8x32xf32>
    %19 = vector.shape_cast %18 : vector<8x8x32xf32> to vector<64x32xf32>
    %c0_26 = arith.constant 0 : index
    %c128 = arith.constant 128 : index
    %20 = vector.load %arg12[%c0_26, %c128] : memref<64x288xf32, #tpu.memory_space<vmem>>, vector<64x32xf32>
    tpu.vector_store %arg12[%c0_26, %c128], %19 {strides = array<i32>} : memref<64x288xf32, #tpu.memory_space<vmem>>, vector<64x32xf32>,
    %c1_27 = arith.constant 1 : index
    %c2_28 = arith.constant 2 : index
    %c0_29 = arith.constant 0 : index
    %21 = vector.load %arg11[%c1_27, %c2_28, %c0_29] : memref<10x10x32xf32, #tpu.memory_space<vmem>>, vector<8x8x32xf32>
    %22 = vector.shape_cast %21 : vector<8x8x32xf32> to vector<64x32xf32>
    %c0_30 = arith.constant 0 : index
    %c160 = arith.constant 160 : index
    %23 = vector.load %arg12[%c0_30, %c160] : memref<64x288xf32, #tpu.memory_space<vmem>>, vector<64x32xf32>
    tpu.vector_store %arg12[%c0_30, %c160], %22 {strides = array<i32>} : memref<64x288xf32, #tpu.memory_space<vmem>>, vector<64x32xf32>,
    %c2_31 = arith.constant 2 : index
    %c0_32 = arith.constant 0 : index
    %c0_33 = arith.constant 0 : index
    %24 = vector.load %arg11[%c2_31, %c0_32, %c0_33] : memref<10x10x32xf32, #tpu.memory_space<vmem>>, vector<8x8x32xf32>
    %25 = vector.shape_cast %24 : vector<8x8x32xf32> to vector<64x32xf32>
    %c0_34 = arith.constant 0 : index
    %c192 = arith.constant 192 : index
    %26 = vector.load %arg12[%c0_34, %c192] : memref<64x288xf32, #tpu.memory_space<vmem>>, vector<64x32xf32>
    tpu.vector_store %arg12[%c0_34, %c192], %25 {strides = array<i32>} : memref<64x288xf32, #tpu.memory_space<vmem>>, vector<64x32xf32>,
    %c2_35 = arith.constant 2 : index
    %c1_36 = arith.constant 1 : index
    %c0_37 = arith.constant 0 : index
    %27 = vector.load %arg11[%c2_35, %c1_36, %c0_37] : memref<10x10x32xf32, #tpu.memory_space<vmem>>, vector<8x8x32xf32>
    %28 = vector.shape_cast %27 : vector<8x8x32xf32> to vector<64x32xf32>
    %c0_38 = arith.constant 0 : index
    %c224 = arith.constant 224 : index
    %29 = vector.load %arg12[%c0_38, %c224] : memref<64x288xf32, #tpu.memory_space<vmem>>, vector<64x32xf32>
    tpu.vector_store %arg12[%c0_38, %c224], %28 {strides = array<i32>} : memref<64x288xf32, #tpu.memory_space<vmem>>, vector<64x32xf32>,
    %c2_39 = arith.constant 2 : index
    %c2_40 = arith.constant 2 : index
    %c0_41 = arith.constant 0 : index
    %30 = vector.load %arg11[%c2_39, %c2_40, %c0_41] : memref<10x10x32xf32, #tpu.memory_space<vmem>>, vector<8x8x32xf32>
    %31 = vector.shape_cast %30 : vector<8x8x32xf32> to vector<64x32xf32>
    %c0_42 = arith.constant 0 : index
    %c256 = arith.constant 256 : index
    %32 = vector.load %arg12[%c0_42, %c256] : memref<64x288xf32, #tpu.memory_space<vmem>>, vector<64x32xf32>
    tpu.vector_store %arg12[%c0_42, %c256], %31 {strides = array<i32>} : memref<64x288xf32, #tpu.memory_space<vmem>>, vector<64x32xf32>,
    %c0_43 = arith.constant 0 : index
    %c0_44 = arith.constant 0 : index
    %33 = vector.load %arg12[%c0_43, %c0_44] : memref<64x288xf32, #tpu.memory_space<vmem>>, vector<64x288xf32>
    %34 = arith.truncf %33 : vector<64x288xf32> to vector<64x288xbf16>
    %c0_45 = arith.constant 0 : index
    %c0_46 = arith.constant 0 : index
    %35 = vector.load %arg2[%c0_45, %c0_46] : memref<288x32xbf16, #tpu.memory_space<vmem>>, vector<288x32xbf16>
    %cst_47 = arith.constant dense<0.000000e+00> : vector<64x32xf32>
    %36 = tpu.matmul %34, %35, %cst_47 {dimension_numbers = #tpu.dot_dimension_numbers<[1], [0], [0], [1], [0, 0, 1, 1], [], []>} : vector<64x288xbf16>, vector<288x32xbf16>, vector<64x32xf32> -> vector<64x32xf32>
    %c0_48 = arith.constant 0 : index
    %c0_49 = arith.constant 0 : index
    %37 = vector.load %arg3[%c0_48, %c0_49] : memref<1x32xf32, #tpu.memory_space<vmem>>, vector<1x32xf32>
    %38 = vector.broadcast %37 : vector<1x32xf32> to vector<64x32xf32>
    %39 = arith.addf %36, %38 : vector<64x32xf32>
    %cst_50 = arith.constant 0.000000e+00 : f32
    %40 = vector.broadcast %cst_50 : f32 to vector<64x32xf32>
    %41 = arith.maximumf %39, %40 : vector<64x32xf32>
    %42 = vector.shape_cast %41 : vector<64x32xf32> to vector<8x8x32xf32>
    %c1_51 = arith.constant 1 : index
    %c1_52 = arith.constant 1 : index
    %c0_53 = arith.constant 0 : index
    %43 = vector.load %arg11[%c1_51, %c1_52, %c0_53] : memref<10x10x32xf32, #tpu.memory_space<vmem>>, vector<8x8x32xf32>
    tpu.vector_store %arg11[%c1_51, %c1_52, %c0_53], %42 {strides = array<i32>} : memref<10x10x32xf32, #tpu.memory_space<vmem>>, vector<8x8x32xf32>,
    %c0_54 = arith.constant 0 : index
    %c0_55 = arith.constant 0 : index
    %c0_56 = arith.constant 0 : index
    %44 = vector.load %arg11[%c0_54, %c0_55, %c0_56] : memref<10x10x32xf32, #tpu.memory_space<vmem>>, vector<8x8x32xf32>
    %45 = vector.shape_cast %44 : vector<8x8x32xf32> to vector<64x32xf32>
    %c0_57 = arith.constant 0 : index
    %c0_58 = arith.constant 0 : index
    %46 = vector.load %arg12[%c0_57, %c0_58] : memref<64x288xf32, #tpu.memory_space<vmem>>, vector<64x32xf32>
    tpu.vector_store %arg12[%c0_57, %c0_58], %45 {strides = array<i32>} : memref<64x288xf32, #tpu.memory_space<vmem>>, vector<64x32xf32>,
    %c0_59 = arith.constant 0 : index
    %c1_60 = arith.constant 1 : index
    %c0_61 = arith.constant 0 : index
    %47 = vector.load %arg11[%c0_59, %c1_60, %c0_61] : memref<10x10x32xf32, #tpu.memory_space<vmem>>, vector<8x8x32xf32>
    %48 = vector.shape_cast %47 : vector<8x8x32xf32> to vector<64x32xf32>
    %c0_62 = arith.constant 0 : index
    %c32_63 = arith.constant 32 : index
    %49 = vector.load %arg12[%c0_62, %c32_63] : memref<64x288xf32, #tpu.memory_space<vmem>>, vector<64x32xf32>
    tpu.vector_store %arg12[%c0_62, %c32_63], %48 {strides = array<i32>} : memref<64x288xf32, #tpu.memory_space<vmem>>, vector<64x32xf32>,
    %c0_64 = arith.constant 0 : index
    %c2_65 = arith.constant 2 : index
    %c0_66 = arith.constant 0 : index
    %50 = vector.load %arg11[%c0_64, %c2_65, %c0_66] : memref<10x10x32xf32, #tpu.memory_space<vmem>>, vector<8x8x32xf32>
    %51 = vector.shape_cast %50 : vector<8x8x32xf32> to vector<64x32xf32>
    %c0_67 = arith.constant 0 : index
    %c64_68 = arith.constant 64 : index
    %52 = vector.load %arg12[%c0_67, %c64_68] : memref<64x288xf32, #tpu.memory_space<vmem>>, vector<64x32xf32>
    tpu.vector_store %arg12[%c0_67, %c64_68], %51 {strides = array<i32>} : memref<64x288xf32, #tpu.memory_space<vmem>>, vector<64x32xf32>,
    %c1_69 = arith.constant 1 : index
    %c0_70 = arith.constant 0 : index
    %c0_71 = arith.constant 0 : index
    %53 = vector.load %arg11[%c1_69, %c0_70, %c0_71] : memref<10x10x32xf32, #tpu.memory_space<vmem>>, vector<8x8x32xf32>
    %54 = vector.shape_cast %53 : vector<8x8x32xf32> to vector<64x32xf32>
    %c0_72 = arith.constant 0 : index
    %c96_73 = arith.constant 96 : index
    %55 = vector.load %arg12[%c0_72, %c96_73] : memref<64x288xf32, #tpu.memory_space<vmem>>, vector<64x32xf32>
    tpu.vector_store %arg12[%c0_72, %c96_73], %54 {strides = array<i32>} : memref<64x288xf32, #tpu.memory_space<vmem>>, vector<64x32xf32>,
    %c1_74 = arith.constant 1 : index
    %c1_75 = arith.constant 1 : index
    %c0_76 = arith.constant 0 : index
    %56 = vector.load %arg11[%c1_74, %c1_75, %c0_76] : memref<10x10x32xf32, #tpu.memory_space<vmem>>, vector<8x8x32xf32>
    %57 = vector.shape_cast %56 : vector<8x8x32xf32> to vector<64x32xf32>
    %c0_77 = arith.constant 0 : index
    %c128_78 = arith.constant 128 : index
    %58 = vector.load %arg12[%c0_77, %c128_78] : memref<64x288xf32, #tpu.memory_space<vmem>>, vector<64x32xf32>
    tpu.vector_store %arg12[%c0_77, %c128_78], %57 {strides = array<i32>} : memref<64x288xf32, #tpu.memory_space<vmem>>, vector<64x32xf32>,
    %c1_79 = arith.constant 1 : index
    %c2_80 = arith.constant 2 : index
    %c0_81 = arith.constant 0 : index
    %59 = vector.load %arg11[%c1_79, %c2_80, %c0_81] : memref<10x10x32xf32, #tpu.memory_space<vmem>>, vector<8x8x32xf32>
    %60 = vector.shape_cast %59 : vector<8x8x32xf32> to vector<64x32xf32>
    %c0_82 = arith.constant 0 : index
    %c160_83 = arith.constant 160 : index
    %61 = vector.load %arg12[%c0_82, %c160_83] : memref<64x288xf32, #tpu.memory_space<vmem>>, vector<64x32xf32>
    tpu.vector_store %arg12[%c0_82, %c160_83], %60 {strides = array<i32>} : memref<64x288xf32, #tpu.memory_space<vmem>>, vector<64x32xf32>,
    %c2_84 = arith.constant 2 : index
    %c0_85 = arith.constant 0 : index
    %c0_86 = arith.constant 0 : index
    %62 = vector.load %arg11[%c2_84, %c0_85, %c0_86] : memref<10x10x32xf32, #tpu.memory_space<vmem>>, vector<8x8x32xf32>
    %63 = vector.shape_cast %62 : vector<8x8x32xf32> to vector<64x32xf32>
    %c0_87 = arith.constant 0 : index
    %c192_88 = arith.constant 192 : index
    %64 = vector.load %arg12[%c0_87, %c192_88] : memref<64x288xf32, #tpu.memory_space<vmem>>, vector<64x32xf32>
    tpu.vector_store %arg12[%c0_87, %c192_88], %63 {strides = array<i32>} : memref<64x288xf32, #tpu.memory_space<vmem>>, vector<64x32xf32>,
    %c2_89 = arith.constant 2 : index
    %c1_90 = arith.constant 1 : index
    %c0_91 = arith.constant 0 : index
    %65 = vector.load %arg11[%c2_89, %c1_90, %c0_91] : memref<10x10x32xf32, #tpu.memory_space<vmem>>, vector<8x8x32xf32>
    %66 = vector.shape_cast %65 : vector<8x8x32xf32> to vector<64x32xf32>
    %c0_92 = arith.constant 0 : index
    %c224_93 = arith.constant 224 : index
    %67 = vector.load %arg12[%c0_92, %c224_93] : memref<64x288xf32, #tpu.memory_space<vmem>>, vector<64x32xf32>
    tpu.vector_store %arg12[%c0_92, %c224_93], %66 {strides = array<i32>} : memref<64x288xf32, #tpu.memory_space<vmem>>, vector<64x32xf32>,
    %c2_94 = arith.constant 2 : index
    %c2_95 = arith.constant 2 : index
    %c0_96 = arith.constant 0 : index
    %68 = vector.load %arg11[%c2_94, %c2_95, %c0_96] : memref<10x10x32xf32, #tpu.memory_space<vmem>>, vector<8x8x32xf32>
    %69 = vector.shape_cast %68 : vector<8x8x32xf32> to vector<64x32xf32>
    %c0_97 = arith.constant 0 : index
    %c256_98 = arith.constant 256 : index
    %70 = vector.load %arg12[%c0_97, %c256_98] : memref<64x288xf32, #tpu.memory_space<vmem>>, vector<64x32xf32>
    tpu.vector_store %arg12[%c0_97, %c256_98], %69 {strides = array<i32>} : memref<64x288xf32, #tpu.memory_space<vmem>>, vector<64x32xf32>,
    %c0_99 = arith.constant 0 : index
    %c0_100 = arith.constant 0 : index
    %71 = vector.load %arg12[%c0_99, %c0_100] : memref<64x288xf32, #tpu.memory_space<vmem>>, vector<64x288xf32>
    %72 = arith.truncf %71 : vector<64x288xf32> to vector<64x288xbf16>
    %c0_101 = arith.constant 0 : index
    %c0_102 = arith.constant 0 : index
    %73 = vector.load %arg4[%c0_101, %c0_102] : memref<288x32xbf16, #tpu.memory_space<vmem>>, vector<288x32xbf16>
    %cst_103 = arith.constant dense<0.000000e+00> : vector<64x32xf32>
    %74 = tpu.matmul %72, %73, %cst_103 {dimension_numbers = #tpu.dot_dimension_numbers<[1], [0], [0], [1], [0, 0, 1, 1], [], []>} : vector<64x288xbf16>, vector<288x32xbf16>, vector<64x32xf32> -> vector<64x32xf32>
    %cst_104 = arith.constant dense<0.000000e+00> : vector<32xf32>
    %75 = vector.multi_reduction <add>, %74, %cst_104 [0] : vector<64x32xf32> to vector<32xf32>
    %76 = vector.shape_cast %75 : vector<32xf32> to vector<1x32xf32>
    %cst_105 = arith.constant 6.400000e+01 : f32
    %77 = vector.broadcast %cst_105 : f32 to vector<1x32xf32>
    %78 = arith.divf %76, %77 : vector<1x32xf32>
    %c0_106 = arith.constant 0 : index
    %c0_107 = arith.constant 0 : index
    %79 = vector.load %arg5[%c0_106, %c0_107] : memref<1x32xf32, #tpu.memory_space<vmem>>, vector<1x32xf32>
    %80 = arith.addf %78, %79 : vector<1x32xf32>
    %c0_108 = arith.constant 0 : index
    %c0_109 = arith.constant 0 : index
    %81 = vector.load %arg6[%c0_108, %c0_109] : memref<2x32xf32, #tpu.memory_space<vmem>>, vector<2x32xf32>
    %82 = vector.broadcast %80 : vector<1x32xf32> to vector<2x32xf32>
    %83 = arith.mulf %82, %81 : vector<2x32xf32>
    %cst_110 = arith.constant dense<0.000000e+00> : vector<2xf32>
    %84 = vector.multi_reduction <add>, %83, %cst_110 [1] : vector<2x32xf32> to vector<2xf32>
    %85 = vector.shape_cast %84 : vector<2xf32> to vector<2x1xf32>
    %c0_111 = arith.constant 0 : index
    %c0_112 = arith.constant 0 : index
    %86 = vector.load %arg7[%c0_111, %c0_112] : memref<2x1xf32, #tpu.memory_space<vmem>>, vector<2x1xf32>
    %87 = arith.addf %85, %86 : vector<2x1xf32>
    %cst_113 = arith.constant 0.000000e+00 : f32
    %88 = vector.broadcast %cst_113 : f32 to vector<2x1xf32>
    %89 = arith.maximumf %87, %88 : vector<2x1xf32>
    %c0_114 = arith.constant 0 : index
    %c0_115 = arith.constant 0 : index
    %90 = vector.load %arg8[%c0_114, %c0_115] : memref<2x32xf32, #tpu.memory_space<vmem>>, vector<2x32xf32>
    %91 = vector.broadcast %89 : vector<2x1xf32> to vector<2x32xf32>
    %92 = arith.mulf %91, %90 : vector<2x32xf32>
    %cst_116 = arith.constant dense<0.000000e+00> : vector<32xf32>
    %93 = vector.multi_reduction <add>, %92, %cst_116 [0] : vector<2x32xf32> to vector<32xf32>
    %94 = vector.shape_cast %93 : vector<32xf32> to vector<1x32xf32>
    %c0_117 = arith.constant 0 : index
    %c0_118 = arith.constant 0 : index
    %95 = vector.load %arg9[%c0_117, %c0_118] : memref<1x32xf32, #tpu.memory_space<vmem>>, vector<1x32xf32>
    %96 = arith.addf %94, %95 : vector<1x32xf32>
    %97 = arith.negf %96 : vector<1x32xf32>
    %98 = math.exp %97 : vector<1x32xf32>
    %cst_119 = arith.constant 1.000000e+00 : f32
    %99 = vector.broadcast %cst_119 : f32 to vector<1x32xf32>
    %100 = arith.addf %99, %98 : vector<1x32xf32>
    %101 = arith.divf %99, %100 : vector<1x32xf32>
    %c0_120 = arith.constant 0 : index
    %c0_121 = arith.constant 0 : index
    %102 = vector.load %arg5[%c0_120, %c0_121] : memref<1x32xf32, #tpu.memory_space<vmem>>, vector<1x32xf32>
    %103 = vector.broadcast %102 : vector<1x32xf32> to vector<64x32xf32>
    %104 = arith.addf %74, %103 : vector<64x32xf32>
    %105 = vector.broadcast %101 : vector<1x32xf32> to vector<64x32xf32>
    %106 = arith.mulf %104, %105 : vector<64x32xf32>
    %107 = arith.addf %106, %1 : vector<64x32xf32>
    %cst_122 = arith.constant 0.000000e+00 : f32
    %108 = vector.broadcast %cst_122 : f32 to vector<64x32xf32>
    %109 = arith.maximumf %107, %108 : vector<64x32xf32>
    %c0_123 = arith.constant 0 : index
    %c0_124 = arith.constant 0 : index
    %c0_125 = arith.constant 0 : index
    %110 = vector.load %arg10[%c0_123, %c0_124, %c0_125] : memref<1x64x32xf32, #tpu.memory_space<vmem>>, vector<1x64x32xf32>
    %111 = vector.shape_cast %110 : vector<1x64x32xf32> to vector<64x32xf32>
    %112 = vector.shape_cast %109 : vector<64x32xf32> to vector<1x64x32xf32>
    tpu.vector_store %arg10[%c0_123, %c0_124, %c0_125], %112 {strides = array<i32>} : memref<1x64x32xf32, #tpu.memory_space<vmem>>, vector<1x64x32xf32>,
    return
  }
  func.func @transform_0(%arg0: i32) -> (i32, i32, i32) {
    %c0_i32 = arith.constant 0 : i32
    %c0_i32_0 = arith.constant 0 : i32
    %c0_i32_1 = arith.constant 0 : i32
    return %arg0, %c0_i32, %c0_i32_0 : i32, i32, i32
  }
  func.func @transform_1(%arg0: i32) -> (i32, i32) {
    %c0_i32 = arith.constant 0 : i32
    %c0_i32_0 = arith.constant 0 : i32
    %c0_i32_1 = arith.constant 0 : i32
    return %c0_i32, %c0_i32_0 : i32, i32
  }
  func.func @transform_2(%arg0: i32) -> (i32, i32) {
    %c0_i32 = arith.constant 0 : i32
    %c0_i32_0 = arith.constant 0 : i32
    %c0_i32_1 = arith.constant 0 : i32
    return %c0_i32, %c0_i32_0 : i32, i32
  }
  func.func @transform_3(%arg0: i32) -> (i32, i32) {
    %c0_i32 = arith.constant 0 : i32
    %c0_i32_0 = arith.constant 0 : i32
    %c0_i32_1 = arith.constant 0 : i32
    return %c0_i32, %c0_i32_0 : i32, i32
  }
  func.func @transform_4(%arg0: i32) -> (i32, i32) {
    %c0_i32 = arith.constant 0 : i32
    %c0_i32_0 = arith.constant 0 : i32
    %c0_i32_1 = arith.constant 0 : i32
    return %c0_i32, %c0_i32_0 : i32, i32
  }
  func.func @transform_5(%arg0: i32) -> (i32, i32) {
    %c0_i32 = arith.constant 0 : i32
    %c0_i32_0 = arith.constant 0 : i32
    %c0_i32_1 = arith.constant 0 : i32
    return %c0_i32, %c0_i32_0 : i32, i32
  }
  func.func @transform_6(%arg0: i32) -> (i32, i32) {
    %c0_i32 = arith.constant 0 : i32
    %c0_i32_0 = arith.constant 0 : i32
    %c0_i32_1 = arith.constant 0 : i32
    return %c0_i32, %c0_i32_0 : i32, i32
  }
  func.func @transform_7(%arg0: i32) -> (i32, i32) {
    %c0_i32 = arith.constant 0 : i32
    %c0_i32_0 = arith.constant 0 : i32
    %c0_i32_1 = arith.constant 0 : i32
    return %c0_i32, %c0_i32_0 : i32, i32
  }
  func.func @transform_8(%arg0: i32) -> (i32, i32) {
    %c0_i32 = arith.constant 0 : i32
    %c0_i32_0 = arith.constant 0 : i32
    %c0_i32_1 = arith.constant 0 : i32
    return %c0_i32, %c0_i32_0 : i32, i32
  }
  func.func @transform_9(%arg0: i32) -> (i32, i32, i32) {
    %c0_i32 = arith.constant 0 : i32
    %c0_i32_0 = arith.constant 0 : i32
    %c0_i32_1 = arith.constant 0 : i32
    return %arg0, %c0_i32, %c0_i32_0 : i32, i32, i32
  }
}

</mosaic_0001>

<bundles_post_ra>
// kernel: tpu_custom_call.1
= control target key start
LH: loop header
LB: loop body
LE: loop exit
PB: predicated region body
PF: predicated region fallthrough
CT: control target
= control target key end

     0   :  { %s2173_s30 = smov 0   ;;  %s2815_s0 = inlined_call_operand.vmem [shape: f32[2,64,32], index: 0, kind: input, shape index: {}]   ;;  %s2816_s1 = inlined_call_operand.vmem [shape: bf16[288,32], index: 1, kind: input, shape index: {}]   ;;  %s2817_s2 = inlined_call_operand.vmem [shape: f32[1,32], index: 2, kind: input, shape index: {}]   ;;  %s2818_s3 = inlined_call_operand.vmem [shape: bf16[288,32], index: 3, kind: input, shape index: {}]   ;;  %s2819_s4 = inlined_call_operand.vmem [shape: f32[1,32], index: 4, kind: input, shape index: {}]   ;;  %s2820_s5 = inlined_call_operand.vmem [shape: f32[2,32], index: 5, kind: input, shape index: {}]   ;;  %s2821_s6 = inlined_call_operand.vmem [shape: f32[2,1], index: 6, kind: input, shape index: {}]   ;;  %s2822_s7 = inlined_call_operand.vmem [shape: f32[2,32], index: 7, kind: input, shape index: {}]   ;;  %s2823_s8 = inlined_call_operand.vmem [shape: f32[1,32], index: 8, kind: input, shape index: {}]   ;;  %s2824_s9 = inlined_call_operand.vmem [shape: f32[2,64,32], index: 9, kind: output, shape index: {}]  }
   0x1 LB: > { %s1880_s10 = sadd.s32 4294967295, %s2116_s30   ;;  %p1884_p0 = scmp.ge.s32.totalorder %s2116_s30, 1  ;;  %s2116_s30 = sphi %s2173_s30, %s19_s30  }
   0x2   : > { %p287_p1 = scmp.lt.s32.totalorder %s2116_s30, 3 }
   0x4   : > { %p288_p2 = pnand %p1884_p0, %p287_p1 }
   0x5   : > { %p323_p3 = scmp.lt.s32.totalorder (!%p288_p2), %s1880_s10, 1  ;;  %s2119_s25 = smov (!%p288_p2), 32  }
   0x6   : > { %291 = sbr.rel (%p288_p2) target bundleno = 1155 (0x483), region = 56  ;;  %s2120_s26 = smov (!%p288_p2), 64  }
   0x7   : > { %s2121_s29 = smov (!%p288_p2), 96  }
   0xb   : > { %vm342_vm0 = vcmask 261120   ;;  %vm344_vm1 = vcmask 254976   ;;  %v2070_v0 = vld [vmem:[%s2816_s1 + $0x78] sm:$0xff]   ;;  %v2118_v1 = vmov 0.0   ;;  %s2826_s10 = smov (!%p323_p3, %s1880_s10), 1  ;;  %v2072_v3 = vld [vmem:[%s2816_s1 + $0x70] sm:$0xff]  }
   0xc   : > { %343 = vst.msk [vmem:[#allocation2] sm:$0xff] %vm342_vm0, %v2118_v1  ;;  %346 = vst.msk [vmem:[#allocation2 + $0x10] sm:$0xff] %vm342_vm0, %v2118_v1  ;;  %1939 = vmatprep.subr.bf16.mxu0 %v2070_v0  ;;  %v2071_v2 = vld [vmem:[%s2816_s1 + $0x38] sm:$0xff]   ;;  %s1937_s17 = sshll.u32 %s2826_s10, 6  ;;  %v2073_v4 = vld [vmem:[%s2816_s1 + $0x30] sm:$0xff]   ;;  %vm429_vm2 = vcmask 523520  }
   0xd   : > { %345 = vst.msk [vmem:[#allocation2 + $0x8] sm:$0x3] %vm344_vm1, %v2118_v1  ;;  %347 = vst.msk [vmem:[#allocation2 + $0x18] sm:$0x3] %vm344_vm1, %v2118_v1  ;;  %1940 = vmatpush3.bf16.msra.mxu0 %v2071_v2  ;;  %s327_s22 = scalar_lea.vmem %s2815_s0, %s1937_s17  ;;  %v2074_v5 = vld [vmem:[%s2816_s1 + $0x68] sm:$0xff]   ;;  %v2076_v18 = vld [vmem:[%s2816_s1 + $0x60] sm:$0xff]  }
   0xe   : > { %348 = vst.msk [vmem:[#allocation2 + $0x20] sm:$0xff] %vm342_vm0, %v2118_v1  ;;  %350 = vst.msk [vmem:[#allocation2 + $0x30] sm:$0xff] %vm342_vm0, %v2118_v1  ;;  %1941 = vmatprep.subr.bf16.mxu0 %v2072_v3  ;;  %v2228_v6 = vld [vmem:[%s327_s22] sm:$0xff]  ;;  %v2230_v7 = vld [vmem:[%s327_s22 + $0x8] sm:$0xff]  ;;  %vm478_vm3 = vcmask 785920   ;;  %vm527_vm4 = vcmask 1048320  }
   0xf   : > { %349 = vst.msk [vmem:[#allocation2 + $0x28] sm:$0x3] %vm344_vm1, %v2118_v1  ;;  %351 = vst.msk [vmem:[#allocation2 + $0x38] sm:$0x3] %vm344_vm1, %v2118_v1  ;;  %v2232_v8 = vld [vmem:[%s327_s22 + $0x10] sm:$0xff]  ;;  %v2244_v11 = vld [vmem:[%s327_s22 + $0x18] sm:$0xff] }
  0x10   : > { %352 = vst.msk [vmem:[#allocation2 + $0x40] sm:$0xff] %vm342_vm0, %v2118_v1  ;;  %354 = vst.msk [vmem:[#allocation2 + $0x50] sm:$0xff] %vm342_vm0, %v2118_v1  ;;  %v2252_v12 = vld [vmem:[%s327_s22 + $0x20] sm:$0xff]  ;;  %v2254_v13 = vld [vmem:[%s327_s22 + $0x28] sm:$0xff] }
  0x11   : > { %353 = vst.msk [vmem:[#allocation2 + $0x48] sm:$0x3] %vm344_vm1, %v2118_v1  ;;  %355 = vst.msk [vmem:[#allocation2 + $0x58] sm:$0x3] %vm344_vm1, %v2118_v1  ;;  %1942 = vmatpush3.bf16.msra.mxu0 %v2073_v4  ;;  %v2260_v14 = vld [vmem:[%s327_s22 + $0x30] sm:$0xff]  ;;  %v2262_v15 = vld [vmem:[%s327_s22 + $0x38] sm:$0xff]  ;;  %s332_s22 = scalar_lea.vmem %s2824_s9, %s1937_s17 }
  0x12   : > { %356 = vst.msk [vmem:[#allocation2 + $0x60] sm:$0xff] %vm342_vm0, %v2118_v1  ;;  %358 = vst.msk [vmem:[#allocation2 + $0x70] sm:$0xff] %vm342_vm0, %v2118_v1  ;;  %1943 = vmatprep.subr.bf16.mxu0 %v2074_v5  ;;  %v2075_v17 = vld [vmem:[%s2816_s1 + $0x28] sm:$0xff]   ;;  %v2077_v19 = vld [vmem:[%s2816_s1 + $0x20] sm:$0xff]  }
  0x13   : > { %357 = vst.msk [vmem:[#allocation2 + $0x68] sm:$0x3] %vm344_vm1, %v2118_v1  ;;  %359 = vst.msk [vmem:[#allocation2 + $0x78] sm:$0x3] %vm344_vm1, %v2118_v1  ;;  %v2268_v16 = vld [vmem:[#allocation2] sm:$0xff]  ;;  %v2078_v20 = vld [vmem:[%s2816_s1 + $0x58] sm:$0xff]  }
  0x14   : > { %360 = vst.msk [vmem:[#allocation2 + $0x80] sm:$0xff] %vm342_vm0, %v2118_v1  ;;  %362 = vst.msk [vmem:[#allocation2 + $0x90] sm:$0xff] %vm342_vm0, %v2118_v1  ;;  %v2234_v9 = vld [vmem:[#allocation2 + $0x1] sm:$0xff]  ;;  %v2079_v44 = vld [vmem:[%s2816_s1 + $0x18] sm:$0xff]  }
  0x15   : > { %361 = vst.msk [vmem:[#allocation2 + $0x88] sm:$0x3] %vm344_vm1, %v2118_v1  ;;  %363 = vst.msk [vmem:[#allocation2 + $0x98] sm:$0x3] %vm344_vm1, %v2118_v1  ;;  %v2236_v10 = vld [vmem:[#allocation2 + $0x2] sm:$0xff]  ;;  %405 = vrot.lane.b32.xlu1 %v2234_v9, %s2119_s25  ;;  %1944 = vmatpush3.bf16.msra.mxu0 %v2075_v17  ;;  %v2080_v45 = vld [vmem:[%s2816_s1 + $0x50] sm:$0xff]  }
  0x16   : > { %365 = vst.msk [vmem:[#allocation2 + $0x11] sm:$0xff] %vm342_vm0, %v2228_v6  ;;  %366 = vst.msk [vmem:[#allocation2 + $0x21] sm:$0xff] %vm342_vm0, %v2230_v7  ;;  %454 = vrot.lane.b32.xlu0 %v2236_v10, %s2120_s26  ;;  %1945 = vmatprep.subr.bf16.mxu0 %v2076_v18  ;;  %v2081_v46 = vld [vmem:[%s2816_s1 + $0x10] sm:$0xff]   ;;  %v2082_v47 = vld [vmem:[%s2816_s1 + $0x48] sm:$0xff]  }
  0x17   : > { %367 = vst.msk [vmem:[#allocation2 + $0x31] sm:$0xff] %vm342_vm0, %v2232_v8  ;;  %368 = vst.msk [vmem:[#allocation2 + $0x41] sm:$0xff] %vm342_vm0, %v2244_v11  ;;  %v2083_v48 = vld [vmem:[%s2816_s1 + $0x8] sm:$0xff]   ;;  %v2084_v49 = vld [vmem:[%s2816_s1 + $0x40] sm:$0xff]  }
  0x18   : > { %369 = vst.msk [vmem:[#allocation2 + $0x51] sm:$0xff] %vm342_vm0, %v2252_v12  ;;  %370 = vst.msk [vmem:[#allocation2 + $0x61] sm:$0xff] %vm342_vm0, %v2254_v13  ;;  %v2085_v50 = vld [vmem:[%s2816_s1 + $0x88] sm:$0xff]   ;;  %v2086_v51 = vld [vmem:[%s2816_s1] sm:$0xff]  }
  0x19   : > { %371 = vst.msk [vmem:[#allocation2 + $0x71] sm:$0xff] %vm342_vm0, %v2260_v14  ;;  %372 = vst.msk [vmem:[#allocation2 + $0x81] sm:$0xff] %vm342_vm0, %v2262_v15  ;;  %1946 = vmatpush3.bf16.msra.mxu0 %v2077_v19  ;;  %v2087_v52 = vld [vmem:[%s2816_s1 + $0x80] sm:$0xff]   ;;  %2031 = vmatprep.subr.bf16.mxu1 %v2085_v50 }
  0x1a   : > { %381 = vst.msk [vmem:[#allocation3] sm:$0xff] %vm342_vm0, %v2268_v16  ;;  %1947 = vmatprep.subr.bf16.mxu0 %v2078_v20  ;;  %2032 = vmatpush3.bf16.msra.mxu1 %v2085_v50 }
  0x1b   : > { %2033 = vmatprep.subr.bf16.mxu1 %v2087_v52  ;;  %v608_v3 = vld [vmem:[#allocation2 + $0x90] sm:$0xff] }
  0x1c   : > { %v704_v59 = vld [vmem:[#allocation2 + $0x92] sm:$0xff] }
  0x1d   : > { %v552_v21 = vld [vmem:[#allocation2 + $0x12] sm:$0xff]  ;;  %v2284_v23 = vld [vmem:[#allocation2 + $0x22] sm:$0xff]  ;;  %1948 = vmatpush3.bf16.msra.mxu0 %v2079_v44  ;;  %712 = vst.msk [vmem:[#allocation3 + $0xb8] sm:$0xff] %vm342_vm0, %v704_v59 }
  0x1e   : > { %v390_v22 = vld [vmem:[#allocation2 + $0x11] sm:$0xff]  ;;  %568 = vrot.lane.b32.xlu0 %v552_v21, %s2119_s25  ;;  %v601_v25 = vld [vmem:[#allocation2 + $0x20] sm:$0xff]  ;;  %705 = vst.msk [vmem:[#allocation3 + $0x10] sm:$0xff] %vm342_vm0, %v2284_v23  ;;  %1949 = vmatprep.subr.bf16.mxu0 %v2080_v45 }
  0x1f   : > { %407 = vrot.lane.b32.xlu1 %v390_v22, %s2119_s25  ;;  %v2288_v24 = vld [vmem:[#allocation2 + $0x30] sm:$0xff]  ;;  %v2290_v26 = vld [vmem:[#allocation2 + $0x21] sm:$0xff]  ;;  %544 = vst.msk [vmem:[#allocation3 + $0x8] sm:$0xff] %vm342_vm0, %v390_v22  ;;  %383 = vst.msk [vmem:[#allocation3 + $0x30] sm:$0xff] %vm342_vm0, %v601_v25  ;;  %2034 = vmatpush3.bf16.msra.mxu1 %v2087_v52 }
  0x20   : > { %v2295_v27 = vld [vmem:[#allocation2 + $0x31] sm:$0xff]  ;;  %545 = vst.msk [vmem:[#allocation3 + $0x20] sm:$0xff] %vm342_vm0, %v2290_v26  ;;  %384 = vst.msk [vmem:[#allocation3 + $0x48] sm:$0xff] %vm342_vm0, %v2288_v24  ;;  %v2304_v30 = vld [vmem:[#allocation2 + $0x42] sm:$0xff] }
  0x21   : > { %v487_v28 = vld [vmem:[#allocation2 + $0x10] sm:$0xff]  ;;  %v2306_v31 = vld [vmem:[#allocation2 + $0x40] sm:$0xff]  ;;  %546 = vst.msk [vmem:[#allocation3 + $0x38] sm:$0xff] %vm342_vm0, %v2295_v27  ;;  %707 = vst.msk [vmem:[#allocation3 + $0x40] sm:$0xff] %vm342_vm0, %v2304_v30  ;;  %1950 = vmatpush3.bf16.msra.mxu0 %v2081_v46 }
  0x22   : > { %v2297_v29 = vld [vmem:[#allocation2 + $0x32] sm:$0xff]  ;;  %382 = vst.msk [vmem:[#allocation3 + $0x18] sm:$0xff] %vm342_vm0, %v487_v28  ;;  %v2315_v33 = vld [vmem:[#allocation2 + $0x41] sm:$0xff]  ;;  %385 = vst.msk [vmem:[#allocation3 + $0x60] sm:$0xff] %vm342_vm0, %v2306_v31  ;;  %570 = vrot.lane.b32.xlu0 %v2284_v23, %s2119_s25  ;;  %1951 = vmatprep.subr.bf16.mxu0 %v2082_v47 }
  0x23   : > { %v2308_v32 = vld [vmem:[#allocation2 + $0x50] sm:$0xff]  ;;  %706 = vst.msk [vmem:[#allocation3 + $0x28] sm:$0xff] %vm342_vm0, %v2297_v29  ;;  %619 = vrot.lane.b32.xlu1 %v2288_v24, %s2120_s26  ;;  %v2331_v36 = vld [vmem:[#allocation2 + $0x62] sm:$0xff]  ;;  %547 = vst.msk [vmem:[#allocation3 + $0x50] sm:$0xff] %vm342_vm0, %v2315_v33 }
  0x24   : > { %v2317_v34 = vld [vmem:[#allocation2 + $0x51] sm:$0xff]  ;;  %386 = vst.msk [vmem:[#allocation3 + $0x78] sm:$0xff] %vm342_vm0, %v2308_v32  ;;  %v2333_v37 = vld [vmem:[#allocation2 + $0x60] sm:$0xff]  ;;  %709 = vst.msk [vmem:[#allocation3 + $0x70] sm:$0xff] %vm342_vm0, %v2331_v36 }
  0x25   : > { %v2319_v35 = vld [vmem:[#allocation2 + $0x52] sm:$0xff]  ;;  %548 = vst.msk [vmem:[#allocation3 + $0x68] sm:$0xff] %vm342_vm0, %v2317_v34  ;;  %v2343_v39 = vld [vmem:[#allocation2 + $0x61] sm:$0xff]  ;;  %387 = vst.msk [vmem:[#allocation3 + $0x90] sm:$0xff] %vm342_vm0, %v2333_v37  ;;  %1952 = vmatpush3.bf16.msra.mxu0 %v2083_v48 }
  0x26   : > { %v2335_v38 = vld [vmem:[#allocation2 + $0x70] sm:$0xff]  ;;  %708 = vst.msk [vmem:[#allocation3 + $0x58] sm:$0xff] %vm342_vm0, %v2319_v35  ;;  %v2355_v42 = vld [vmem:[#allocation2 + $0x82] sm:$0xff]  ;;  %549 = vst.msk [vmem:[#allocation3 + $0x80] sm:$0xff] %vm342_vm0, %v2343_v39  ;;  %617 = vrot.lane.b32.xlu0 %v601_v25, %s2120_s26  ;;  %1953 = vmatprep.subr.bf16.mxu0 %v2084_v49 }
  0x27   : > { %v2345_v40 = vld [vmem:[#allocation2 + $0x71] sm:$0xff]  ;;  %388 = vst.msk [vmem:[#allocation3 + $0xa8] sm:$0xff] %vm342_vm0, %v2335_v38  ;;  %v2357_v43 = vld [vmem:[#allocation2 + $0x81] sm:$0xff]  ;;  %711 = vst.msk [vmem:[#allocation3 + $0xa0] sm:$0xff] %vm342_vm0, %v2355_v42  ;;  %456 = vrot.lane.b32.xlu1 %v552_v21, %s2120_s26 }
  0x28   : > { %v2347_v41 = vld [vmem:[#allocation2 + $0x72] sm:$0xff]  ;;  %550 = vst.msk [vmem:[#allocation3 + $0x98] sm:$0xff] %vm342_vm0, %v2345_v40  ;;  %551 = vst.msk [vmem:[#allocation3 + $0xb0] sm:$0xff] %vm342_vm0, %v2357_v43  ;;  %v721_v56 = vld [vmem:[#allocation3 + $0x40] sm:$0xff] }
  0x29   : > { %710 = vst.msk [vmem:[#allocation3 + $0x88] sm:$0xff] %vm342_vm0, %v2347_v41  ;;  %v715_v53 = vld [vmem:[#allocation3 + $0x10] sm:$0xff]  ;;  %1954 = vmatpush3.bf16.msra.mxu0 %v2086_v51  ;;  %v736_v0 = vld [vmem:[#allocation3 + $0xb8] sm:$0xff]  ;;  %v607_v2 = vld [vmem:[#allocation2 + $0x80] sm:$0xff] }
  0x2a   : > { %665 = vrot.lane.b32.xlu0 %v2290_v26, %s2121_s29  ;;  %v718_v54 = vld [vmem:[#allocation3 + $0x28] sm:$0xff]  ;;  %1393 = vst.msk [vmem:[#allocation3 + $0xb8] sm:$0xff] %vm342_vm0, %v704_v59  ;;  %v656_v4 = vld [vmem:[#allocation2 + $0x91] sm:$0xff] }
  0x2b   : > { %667 = vrot.lane.b32.xlu1 %v2295_v27, %s2121_s29  ;;  %v739_v55 = vpack.c.bf16 %v718_v54, %v715_v53  ;;  %v727_v60 = vld [vmem:[#allocation3 + $0x70] sm:$0xff] }
  0x2d   : > { %v724_v57 = vld [vmem:[#allocation3 + $0x58] sm:$0xff]  ;;  %2035 = vmatprep.mubr.msk.bf16.mxu1 %vm342_vm0, %v739_v55 }
  0x2e   : > { %503 = vrot.lane.b32.xlu0 %v487_v28, %s2121_s29  ;;  %v742_v58 = vpack.c.bf16 %v724_v57, %v721_v56  ;;  %v733_v63 = vld [vmem:[#allocation3 + $0xa0] sm:$0xff] }
  0x2f   : > { %505 = vrot.lane.b32.xlu1 %v601_v25, %s2121_s29  ;;  %v748_v1 = vpack.c.bf16 %v736_v0, %v733_v63 }
  0x30   : > { %2036 = vmatmul.mubr.msk.bf16.vlgmr.msra.gmra.mxu1 %vm342_vm0, %v742_v58  ;;  %v730_v61 = vld [vmem:[#allocation3 + $0x88] sm:$0xff] }
  0x31   : > { %v745_v62 = vpack.c.bf16 %v730_v61, %v727_v60 }
  0x32   : > { %572 = vrot.lane.b32.xlu0 %v2297_v29, %s2119_s25 }
  0x33   : > { %574 = vrot.lane.b32.xlu1 %v2304_v30, %s2119_s25  ;;  %2039 = vmatprep.mubr.msk.bf16.mxu1 %vm342_vm0, %v745_v62 }
  0x36   : > { %409 = vrot.lane.b32.xlu0 %v2290_v26, %s2119_s25 }
  0x37   : > { %411 = vrot.lane.b32.xlu1 %v2295_v27, %s2119_s25 }
  0x38   : > { %2040 = vmatmul.mubr.msk.bf16.gmra.mxu1 %vm342_vm0, %v748_v1 }
  0x3a   : > { %621 = vrot.lane.b32.xlu0 %v2306_v31, %s2120_s26 }
  0x3b   : > { %623 = vrot.lane.b32.xlu1 %v2308_v32, %s2120_s26 }
  0x3e   : > { %458 = vrot.lane.b32.xlu0 %v2284_v23, %s2120_s26 }
  0x3f   : > { %460 = vrot.lane.b32.xlu1 %v2297_v29, %s2120_s26 }
  0x42   : > { %669 = vrot.lane.b32.xlu0 %v2315_v33, %s2121_s29 }
  0x43   : > { %671 = vrot.lane.b32.xlu1 %v2317_v34, %s2121_s29 }
  0x46   : > { %507 = vrot.lane.b32.xlu0 %v2288_v24, %s2121_s29 }
  0x47   : > { %509 = vrot.lane.b32.xlu1 %v2306_v31, %s2121_s29 }
  0x4a   : > { %576 = vrot.lane.b32.xlu0 %v2319_v35, %s2119_s25 }
  0x4b   : > { %578 = vrot.lane.b32.xlu1 %v2331_v36, %s2119_s25 }
  0x4e   : > { %413 = vrot.lane.b32.xlu0 %v2315_v33, %s2119_s25 }
  0x4f   : > { %415 = vrot.lane.b32.xlu1 %v2317_v34, %s2119_s25 }
  0x52   : > { %625 = vrot.lane.b32.xlu0 %v2333_v37, %s2120_s26 }
  0x53   : > { %627 = vrot.lane.b32.xlu1 %v2335_v38, %s2120_s26 }
  0x56   : > { %462 = vrot.lane.b32.xlu0 %v2304_v30, %s2120_s26 }
  0x57   : > { %464 = vrot.lane.b32.xlu1 %v2319_v35, %s2120_s26 }
  0x5a   : > { %673 = vrot.lane.b32.xlu0 %v2343_v39, %s2121_s29 }
  0x5b   : > { %675 = vrot.lane.b32.xlu1 %v2345_v40, %s2121_s29 }
  0x5e   : > { %511 = vrot.lane.b32.xlu0 %v2308_v32, %s2121_s29 }
  0x5f   : > { %513 = vrot.lane.b32.xlu1 %v2333_v37, %s2121_s29 }
  0x62   : > { %580 = vrot.lane.b32.xlu0 %v2347_v41, %s2119_s25 }
  0x63   : > { %582 = vrot.lane.b32.xlu1 %v2355_v42, %s2119_s25 }
  0x66   : > { %417 = vrot.lane.b32.xlu0 %v2343_v39, %s2119_s25 }
  0x67   : > { %419 = vrot.lane.b32.xlu1 %v2345_v40, %s2119_s25 }
  0x6a   : > { %629 = vrot.lane.b32.xlu0 %v607_v2, %s2120_s26 }
  0x6b   : > { %631 = vrot.lane.b32.xlu1 %v608_v3, %s2120_s26 }
  0x6e   : > { %466 = vrot.lane.b32.xlu0 %v2331_v36, %s2120_s26 }
  0x6f   : > { %468 = vrot.lane.b32.xlu1 %v2347_v41, %s2120_s26 }
  0x72   : > { %677 = vrot.lane.b32.xlu0 %v2357_v43, %s2121_s29 }
  0x73   : > { %679 = vrot.lane.b32.xlu1 %v656_v4, %s2121_s29 }
  0x76   : > { %515 = vrot.lane.b32.xlu0 %v2335_v38, %s2121_s29 }
  0x77   : > { %517 = vrot.lane.b32.xlu1 %v607_v2, %s2121_s29 }
  0x7a   : > { %1090 = vrot.lane.b32.xlu0 %v2234_v9, %s2119_s25 }
  0x7b   : > { %1312 = vrot.lane.b32.xlu1 %v608_v3, %s2120_s26 }
  0x7e   : > { %1138 = vrot.lane.b32.xlu0 %v2236_v10, %s2120_s26 }
  0x7f   : > { %1360 = vrot.lane.b32.xlu1 %v656_v4, %s2121_s29 }
  0x87   : > { %v406_v5 = vpop.permute.xlu1 %405 }
  0x88   : > { %v455_v17 = vpop.permute.xlu0 %454  ;;  %430 = vst.msk [vmem:[#allocation3] sm:$0xff] %vm429_vm2, %v406_v5 }
  0x89   : > { %479 = vst.msk [vmem:[#allocation3] sm:$0xff] %vm478_vm3, %v455_v17 }
  0x90   : > { %v569_v18 = vpop.permute.xlu0 %568 }
  0x91   : > { %v408_v19 = vpop.permute.xlu1 %407  ;;  %592 = vst.msk [vmem:[#allocation3 + $0x8] sm:$0xff] %vm429_vm2, %v569_v18 }
  0x92   : > { %431 = vst.msk [vmem:[#allocation3 + $0x18] sm:$0xff] %vm429_vm2, %v408_v19 }
  0x94   : > { %v571_v9 = vpop.permute.xlu0 %570 }
  0x95   : > { %v620_v20 = vpop.permute.xlu1 %619  ;;  %593 = vst.msk [vmem:[#allocation3 + $0x20] sm:$0xff] %vm429_vm2, %v571_v9 }
  0x96   : > { %642 = vst.msk [vmem:[#allocation3 + $0x20] sm:$0xff] %vm478_vm3, %v620_v20 }
  0x98   : > { %v618_v10 = vpop.permute.xlu0 %617 }
  0x99   : > { %v457_v21 = vpop.permute.xlu1 %456  ;;  %641 = vst.msk [vmem:[#allocation3 + $0x8] sm:$0xff] %vm478_vm3, %v618_v10 }
  0x9a   : > { %480 = vst.msk [vmem:[#allocation3 + $0x18] sm:$0xff] %vm478_vm3, %v457_v21 }
  0x9c   : > { %v666_v22 = vpop.permute.xlu0 %665 }
  0x9d   : > { %v668_v23 = vpop.permute.xlu1 %667  ;;  %689 = vst.msk [vmem:[#allocation3 + $0x8] sm:$0xff] %vm527_vm4, %v666_v22 }
  0x9e   : > { %690 = vst.msk [vmem:[#allocation3 + $0x20] sm:$0xff] %vm527_vm4, %v668_v23 }
  0xa0   : > { %v504_v24 = vpop.permute.xlu0 %503 }
  0xa1   : > { %v506_v25 = vpop.permute.xlu1 %505  ;;  %528 = vst.msk [vmem:[#allocation3] sm:$0xff] %vm527_vm4, %v504_v24 }
  0xa2   : > { %529 = vst.msk [vmem:[#allocation3 + $0x18] sm:$0xff] %vm527_vm4, %v506_v25 }
  0xa4   : > { %v573_v26 = vpop.permute.xlu0 %572  ;;  %v714_v28 = vld [vmem:[#allocation3 + $0x8] sm:$0xff] }
  0xa5   : > { %v575_v27 = vpop.permute.xlu1 %574  ;;  %v717_v29 = vld [vmem:[#allocation3 + $0x20] sm:$0xff]  ;;  %594 = vst.msk [vmem:[#allocation3 + $0x38] sm:$0xff] %vm429_vm2, %v573_v26 }
  0xa6   : > { %595 = vst.msk [vmem:[#allocation3 + $0x50] sm:$0xff] %vm429_vm2, %v575_v27  ;;  %v738_v30 = vpack.c.bf16 %v717_v29, %v714_v28 }
  0xa8   : > { %944 = vmatprep.mubr.bf16.mxu0 %v738_v30  ;;  %v410_v31 = vpop.permute.xlu0 %409  ;;  %v713_v33 = vld [vmem:[#allocation3] sm:$0xff]  ;;  %v2088_v30 = vld [vmem:[%s2818_s3 + $0x88] sm:$0xff]  }
  0xa9   : > { %v412_v32 = vpop.permute.xlu1 %411  ;;  %v716_v34 = vld [vmem:[#allocation3 + $0x18] sm:$0xff]  ;;  %432 = vst.msk [vmem:[#allocation3 + $0x30] sm:$0xff] %vm429_vm2, %v410_v31  ;;  %2043 = vmatprep.subr.bf16.mxu0 %v2088_v30  ;;  %v2089_v31 = vld [vmem:[%s2818_s3 + $0x80] sm:$0xff]  }
  0xaa   : > { %433 = vst.msk [vmem:[#allocation3 + $0x48] sm:$0xff] %vm429_vm2, %v412_v32  ;;  %v737_v35 = vpack.c.bf16 %v716_v34, %v713_v33 }
  0xab   : > { %1066 = vst.msk [vmem:[#allocation3] sm:$0xff] %vm342_vm0, %v2268_v16 }
  0xac   : > { %945 = vmatmul.mubr.bf16.vlgmr.msra.gmra.mxu0 %v737_v35  ;;  %v622_v36 = vpop.permute.xlu0 %621 }
  0xad   : > { %v624_v37 = vpop.permute.xlu1 %623  ;;  %643 = vst.msk [vmem:[#allocation3 + $0x38] sm:$0xff] %vm478_vm3, %v622_v36  ;;  %2044 = vmatpush3.bf16.msra.mxu0 %v2088_v30 }
  0xae   : > { %644 = vst.msk [vmem:[#allocation3 + $0x50] sm:$0xff] %vm478_vm3, %v624_v37  ;;  %2045 = vmatprep.subr.bf16.mxu0 %v2089_v31 }
  0xb0   : > { %v459_v38 = vpop.permute.xlu0 %458 }
  0xb1   : > { %v461_v39 = vpop.permute.xlu1 %460  ;;  %481 = vst.msk [vmem:[#allocation3 + $0x30] sm:$0xff] %vm478_vm3, %v459_v38  ;;  %2046 = vmatpush3.bf16.msra.mxu0 %v2089_v31  ;;  %v2547_v38 = vld [vmem:[%s2817_s2] ss:$0 sm:$0xff] }
  0xb2   : > { %482 = vst.msk [vmem:[#allocation3 + $0x48] sm:$0xff] %vm478_vm3, %v461_v39 }
  0xb4   : > { %v670_v40 = vpop.permute.xlu0 %669 }
  0xb5   : > { %v672_v41 = vpop.permute.xlu1 %671  ;;  %691 = vst.msk [vmem:[#allocation3 + $0x38] sm:$0xff] %vm527_vm4, %v670_v40 }
  0xb6   : > { %692 = vst.msk [vmem:[#allocation3 + $0x50] sm:$0xff] %vm527_vm4, %v672_v41 }
  0xb8   : > { %v508_v16 = vpop.permute.xlu0 %507 }
  0xb9   : > { %v510_v42 = vpop.permute.xlu1 %509  ;;  %530 = vst.msk [vmem:[#allocation3 + $0x30] sm:$0xff] %vm527_vm4, %v508_v16 }
  0xba   : > { %531 = vst.msk [vmem:[#allocation3 + $0x48] sm:$0xff] %vm527_vm4, %v510_v42 }
  0xbc   : > { %v577_v43 = vpop.permute.xlu0 %576  ;;  %v720_v45 = vld [vmem:[#allocation3 + $0x38] sm:$0xff] }
  0xbd   : > { %v579_v44 = vpop.permute.xlu1 %578  ;;  %v723_v46 = vld [vmem:[#allocation3 + $0x50] sm:$0xff]  ;;  %596 = vst.msk [vmem:[#allocation3 + $0x68] sm:$0xff] %vm429_vm2, %v577_v43 }
  0xbe   : > { %597 = vst.msk [vmem:[#allocation3 + $0x80] sm:$0xff] %vm429_vm2, %v579_v44  ;;  %v741_v47 = vpack.c.bf16 %v723_v46, %v720_v45 }
  0xc0   : > { %952 = vmatprep.mubr.bf16.mxu0 %v741_v47  ;;  %v414_v48 = vpop.permute.xlu0 %413  ;;  %v719_v50 = vld [vmem:[#allocation3 + $0x30] sm:$0xff] }
  0xc1   : > { %v416_v49 = vpop.permute.xlu1 %415  ;;  %v722_v51 = vld [vmem:[#allocation3 + $0x48] sm:$0xff]  ;;  %434 = vst.msk [vmem:[#allocation3 + $0x60] sm:$0xff] %vm429_vm2, %v414_v48  ;;  %v2090_v48 = vld [vmem:[%s2818_s3 + $0x78] sm:$0xff]  }
  0xc2   : > { %435 = vst.msk [vmem:[#allocation3 + $0x78] sm:$0xff] %vm429_vm2, %v416_v49  ;;  %v740_v52 = vpack.c.bf16 %v722_v51, %v719_v50  ;;  %1985 = vmatprep.subr.bf16.mxu1 %v2090_v48  ;;  %v2091_v50 = vld [vmem:[%s2818_s3 + $0x38] sm:$0xff]  }
  0xc3   : > { %1986 = vmatpush3.bf16.msra.mxu1 %v2091_v50 }
  0xc4   : > { %953 = vmatmul.mubr.bf16.gmra.mxu0 %v740_v52  ;;  %v626_v53 = vpop.permute.xlu0 %625  ;;  %v2092_v52 = vld [vmem:[%s2818_s3 + $0x70] sm:$0xff]  }
  0xc5   : > { %v628_v54 = vpop.permute.xlu1 %627  ;;  %645 = vst.msk [vmem:[#allocation3 + $0x68] sm:$0xff] %vm478_vm3, %v626_v53  ;;  %1987 = vmatprep.subr.bf16.mxu1 %v2092_v52  ;;  %v2093_v53 = vld [vmem:[%s2818_s3 + $0x30] sm:$0xff]  }
  0xc6   : > { %646 = vst.msk [vmem:[#allocation3 + $0x80] sm:$0xff] %vm478_vm3, %v628_v54 }
  0xc7   : > { %1988 = vmatpush3.bf16.msra.mxu1 %v2093_v53 }
  0xc8   : > { %v463_v55 = vpop.permute.xlu0 %462 }
  0xc9   : > { %v465_v56 = vpop.permute.xlu1 %464  ;;  %483 = vst.msk [vmem:[#allocation3 + $0x60] sm:$0xff] %vm478_vm3, %v463_v55 }
  0xca   : > { %484 = vst.msk [vmem:[#allocation3 + $0x78] sm:$0xff] %vm478_vm3, %v465_v56 }
  0xcc   : > { %v674_v57 = vpop.permute.xlu0 %673 }
  0xcd   : > { %v676_v58 = vpop.permute.xlu1 %675  ;;  %693 = vst.msk [vmem:[#allocation3 + $0x68] sm:$0xff] %vm527_vm4, %v674_v57  ;;  %v2094_v57 = vld [vmem:[%s2818_s3 + $0x68] sm:$0xff]  }
  0xce   : > { %694 = vst.msk [vmem:[#allocation3 + $0x80] sm:$0xff] %vm527_vm4, %v676_v58  ;;  %v2095_v58 = vld [vmem:[%s2818_s3 + $0x28] sm:$0xff]   ;;  %1989 = vmatprep.subr.bf16.mxu1 %v2094_v57 }
  0xcf   : > { %1990 = vmatpush3.bf16.msra.mxu1 %v2095_v58 }
  0xd0   : > { %v512_v59 = vpop.permute.xlu0 %511 }
  0xd1   : > { %v514_v60 = vpop.permute.xlu1 %513  ;;  %532 = vst.msk [vmem:[#allocation3 + $0x60] sm:$0xff] %vm527_vm4, %v512_v59 }
  0xd2   : > { %533 = vst.msk [vmem:[#allocation3 + $0x78] sm:$0xff] %vm527_vm4, %v514_v60 }
  0xd4   : > { %v581_v61 = vpop.permute.xlu0 %580  ;;  %v726_v63 = vld [vmem:[#allocation3 + $0x68] sm:$0xff] }
  0xd5   : > { %v583_v62 = vpop.permute.xlu1 %582  ;;  %v729_v0 = vld [vmem:[#allocation3 + $0x80] sm:$0xff]  ;;  %598 = vst.msk [vmem:[#allocation3 + $0x98] sm:$0xff] %vm429_vm2, %v581_v61 }
  0xd6   : > { %599 = vst.msk [vmem:[#allocation3 + $0xb0] sm:$0xff] %vm429_vm2, %v583_v62  ;;  %v744_v1 = vpack.c.bf16 %v729_v0, %v726_v63  ;;  %v2096_v62 = vld [vmem:[%s2818_s3 + $0x60] sm:$0xff]  }
  0xd7   : > { %v2097_v0 = vld [vmem:[%s2818_s3 + $0x20] sm:$0xff]   ;;  %1991 = vmatprep.subr.bf16.mxu1 %v2096_v62 }
  0xd8   : > { %960 = vmatprep.mubr.bf16.mxu0 %v744_v1  ;;  %v418_v2 = vpop.permute.xlu0 %417  ;;  %v725_v4 = vld [vmem:[#allocation3 + $0x60] sm:$0xff]  ;;  %1992 = vmatpush3.bf16.msra.mxu1 %v2097_v0 }
  0xd9   : > { %v420_v3 = vpop.permute.xlu1 %419  ;;  %v728_v5 = vld [vmem:[#allocation3 + $0x78] sm:$0xff]  ;;  %436 = vst.msk [vmem:[#allocation3 + $0x90] sm:$0xff] %vm429_vm2, %v418_v2 }
  0xda   : > { %437 = vst.msk [vmem:[#allocation3 + $0xa8] sm:$0xff] %vm429_vm2, %v420_v3  ;;  %v743_v17 = vpack.c.bf16 %v728_v5, %v725_v4  ;;  %v2098_v2 = vld [vmem:[%s2818_s3 + $0x58] sm:$0xff]  }
  0xdb   : > { %1993 = vmatprep.subr.bf16.mxu1 %v2098_v2  ;;  %v2099_v5 = vld [vmem:[%s2818_s3 + $0x18] sm:$0xff]  }
  0xdc   : > { %961 = vmatmul.mubr.bf16.gmra.mxu0 %v743_v17  ;;  %v630_v18 = vpop.permute.xlu0 %629  ;;  %1994 = vmatpush3.bf16.msra.mxu1 %v2099_v5 }
  0xdd   : > { %v632_v19 = vpop.permute.xlu1 %631  ;;  %647 = vst.msk [vmem:[#allocation3 + $0x98] sm:$0xff] %vm478_vm3, %v630_v18 }
  0xde   : > { %648 = vst.msk [vmem:[#allocation3 + $0xb0] sm:$0xff] %vm478_vm3, %v632_v19  ;;  %v2100_v19 = vld [vmem:[%s2818_s3 + $0x50] sm:$0xff]  }
  0xdf   : > { %1995 = vmatprep.subr.bf16.mxu1 %v2100_v19 }
  0xe0   : > { %v467_v9 = vpop.permute.xlu0 %466 }
  0xe1   : > { %v469_v20 = vpop.permute.xlu1 %468  ;;  %485 = vst.msk [vmem:[#allocation3 + $0x90] sm:$0xff] %vm478_vm3, %v467_v9 }
  0xe2   : > { %486 = vst.msk [vmem:[#allocation3 + $0xa8] sm:$0xff] %vm478_vm3, %v469_v20 }
  0xe4   : > { %v678_v10 = vpop.permute.xlu0 %677 }
  0xe5   : > { %v680_v21 = vpop.permute.xlu1 %679  ;;  %695 = vst.msk [vmem:[#allocation3 + $0x98] sm:$0xff] %vm527_vm4, %v678_v10  ;;  %v2101_v10 = vld [vmem:[%s2818_s3 + $0x10] sm:$0xff]  }
  0xe6   : > { %696 = vst.msk [vmem:[#allocation3 + $0xb0] sm:$0xff] %vm527_vm4, %v680_v21  ;;  %1996 = vmatpush3.bf16.msra.mxu1 %v2101_v10 }
  0xe8   : > { %v516_v22 = vpop.permute.xlu0 %515 }
  0xe9   : > { %v518_v23 = vpop.permute.xlu1 %517  ;;  %534 = vst.msk [vmem:[#allocation3 + $0x90] sm:$0xff] %vm527_vm4, %v516_v22 }
  0xea   : > { %535 = vst.msk [vmem:[#allocation3 + $0xa8] sm:$0xff] %vm527_vm4, %v518_v23  ;;  %v2102_v23 = vld [vmem:[%s2818_s3 + $0x48] sm:$0xff]  }
  0xeb   : > { %1997 = vmatprep.subr.bf16.mxu1 %v2102_v23 }
  0xec   : > { %v732_v24 = vld [vmem:[#allocation3 + $0x98] sm:$0xff]  ;;  %v1091_v32 = vpop.permute.xlu0 %1090 }
  0xed   : > { %v735_v25 = vld [vmem:[#allocation3 + $0xb0] sm:$0xff]  ;;  %1114 = vst.msk [vmem:[#allocation3] sm:$0xff] %vm429_vm2, %v1091_v32 }
  0xee   : > { %v747_v26 = vpack.c.bf16 %v735_v25, %v732_v24  ;;  %v2103_v25 = vld [vmem:[%s2818_s3 + $0x8] sm:$0xff]  }
  0xef   : > { %1998 = vmatpush3.bf16.msra.mxu1 %v2103_v25 }
  0xf0   : > { %968 = vmatprep.mubr.bf16.mxu0 %v747_v26  ;;  %v731_v27 = vld [vmem:[#allocation3 + $0x90] sm:$0xff]  ;;  %v1139_v33 = vpop.permute.xlu0 %1138  ;;  %v2542_v34 = vpop.f32.mrf.mxu1 }
  0xf1   : > { %v734_v28 = vld [vmem:[#allocation3 + $0xa8] sm:$0xff]  ;;  %1162 = vst.msk [vmem:[#allocation3] sm:$0xff] %vm478_vm3, %v1139_v33 }
  0xf2   : > { %v746_v29 = vpack.c.bf16 %v734_v28, %v731_v27  ;;  %v1011_v36 = vpop.f32.mrf.mxu1  ;;  %v2104_v27 = vld [vmem:[%s2818_s3 + $0x40] sm:$0xff]  }
  0xf3   : > { %1999 = vmatprep.subr.bf16.mxu1 %v2104_v27  ;;  %v2105_v28 = vld [vmem:[%s2818_s3] sm:$0xff]  }
  0xf4   : > { %969 = vmatmul.mubr.bf16.gmra.mxu0 %v746_v29  ;;  %v2549_v41 = vpop.f32.mrf.mxu1  ;;  %2000 = vmatpush3.bf16.msra.mxu1 %v2105_v28  ;;  %v1417_v28 = vld [vmem:[#allocation3 + $0xb8] sm:$0xff] }
  0xf6   : > { %v1014_v45 = vpop.f32.mrf.mxu1 }
  0xf8   : > { %v2629_v32 = vpop.f32.mrf.mxu1 }
 0x16c   : > { %v1955_v35 = vpop.f32.mrf.mxu0 }
 0x16e   : > { %v1956_v37 = vpop.f32.mrf.mxu0 }
 0x16f   : > { %v1957_v39 = vadd.f32 %v1956_v37, %v1955_v35  ;;  %v1027_v37 = vpop.f32.mrf.mxu1 }
 0x170   : > { %v1958_v40 = vpop.f32.mrf.mxu0 }
 0x171   : > { %v947_v16 = vadd.f32 %v1957_v39, %v2547_v38 }
 0x172   : > { %v1959_v42 = vpop.f32.mrf.mxu0 }
 0x173   : > { %v1960_v43 = vadd.f32 %v1959_v42, %v1958_v40  ;;  %v1012_v44 = vadd.f32 %v1011_v36, %v947_v16 }
 0x175   : > { %v1042_v46 = vmax.f32 %v1012_v44, 0.0  ;;  %v950_v47 = vadd.f32 %v1960_v43, %v2547_v38 }
 0x177   : > { %1050 = vst.msk [vmem:[#allocation2 + $0x11] sm:$0xff] %vm342_vm0, %v1042_v46  ;;  %v1015_v49 = vadd.f32 %v1014_v45, %v950_v47  ;;  %v2042_v45 = vpop.f32.mrf.mxu1 }
 0x179   : > { %v1043_v51 = vmax.f32 %v1015_v49, 0.0 }
 0x17b   : > { %1051 = vst.msk [vmem:[#allocation2 + $0x21] sm:$0xff] %vm342_vm0, %v1043_v51  ;;  %v1030_v51 = vpop.f32.mrf.mxu1 }
 0x17e   : > { %v1234_v54 = vld [vmem:[#allocation2 + $0x12] sm:$0xff] }
 0x17f   : > { %v1075_v55 = vld [vmem:[#allocation2 + $0x11] sm:$0xff]  ;;  %1250 = vrot.lane.b32.xlu0 %v1234_v54, %s2119_s25 }
 0x180   : > { %v1170_v56 = vld [vmem:[#allocation2 + $0x10] sm:$0xff]  ;;  %1092 = vrot.lane.b32.xlu1 %v1075_v55, %s2119_s25  ;;  %1226 = vst.msk [vmem:[#allocation3 + $0x8] sm:$0xff] %vm342_vm0, %v1075_v55 }
 0x181   : > { %1067 = vst.msk [vmem:[#allocation3 + $0x18] sm:$0xff] %vm342_vm0, %v1170_v56 }
 0x182   : > { %v1282_v59 = vld [vmem:[#allocation2 + $0x20] sm:$0xff] }
 0x183   : > { %v1235_v60 = vld [vmem:[#allocation2 + $0x22] sm:$0xff]  ;;  %1186 = vrot.lane.b32.xlu0 %v1170_v56, %s2121_s29  ;;  %1068 = vst.msk [vmem:[#allocation3 + $0x30] sm:$0xff] %vm342_vm0, %v1282_v59 }
 0x184   : > { %v1330_v61 = vld [vmem:[#allocation2 + $0x21] sm:$0xff]  ;;  %1140 = vrot.lane.b32.xlu1 %v1234_v54, %s2120_s26  ;;  %1386 = vst.msk [vmem:[#allocation3 + $0x10] sm:$0xff] %vm342_vm0, %v1235_v60  ;;  %v1961_v63 = vpop.f32.mrf.mxu0 }
 0x185   : > { %1227 = vst.msk [vmem:[#allocation3 + $0x20] sm:$0xff] %vm342_vm0, %v1330_v61 }
 0x186   : > { %v1962_v1 = vpop.f32.mrf.mxu0 }
 0x187   : > { %v1963_v3 = vadd.f32 %v1962_v1, %v1961_v63  ;;  %1298 = vrot.lane.b32.xlu0 %v1282_v59, %s2120_s26 }
 0x188   : > { %1252 = vrot.lane.b32.xlu1 %v1235_v60, %s2119_s25  ;;  %v1964_v4 = vpop.f32.mrf.mxu0 }
 0x189   : > { %v955_v17 = vadd.f32 %v1963_v3, %v2547_v38 }
 0x18a   : > { %v1965_v18 = vpop.f32.mrf.mxu0 }
 0x18b   : > { %v1020_v9 = vadd.f32 %v2542_v34, %v955_v17  ;;  %v1966_v20 = vadd.f32 %v1965_v18, %v1964_v4  ;;  %1346 = vrot.lane.b32.xlu0 %v1330_v61, %s2121_s29  ;;  %v1396_v40 = vld [vmem:[#allocation3 + $0x10] sm:$0xff] }
 0x18c   : > { %1188 = vrot.lane.b32.xlu1 %v1282_v59, %s2121_s29 }
 0x18d   : > { %v1044_v21 = vmax.f32 %v1020_v9, 0.0  ;;  %v958_v22 = vadd.f32 %v1966_v20, %v2547_v38 }
 0x18f   : > { %1052 = vst.msk [vmem:[#allocation2 + $0x31] sm:$0xff] %vm342_vm0, %v1044_v21  ;;  %v1023_v24 = vadd.f32 %v2549_v41, %v958_v22  ;;  %1094 = vrot.lane.b32.xlu0 %v1330_v61, %s2119_s25 }
 0x191   : > { %v1045_v26 = vmax.f32 %v1023_v24, 0.0 }
 0x193   : > { %1053 = vst.msk [vmem:[#allocation2 + $0x41] sm:$0xff] %vm342_vm0, %v1045_v26  ;;  %1142 = vrot.lane.b32.xlu0 %v1235_v60, %s2120_s26 }
 0x196   : > { %v1236_v29 = vld [vmem:[#allocation2 + $0x32] sm:$0xff] }
 0x197   : > { %v1283_v30 = vld [vmem:[#allocation2 + $0x30] sm:$0xff]  ;;  %1254 = vrot.lane.b32.xlu0 %v1236_v29, %s2119_s25  ;;  %1387 = vst.msk [vmem:[#allocation3 + $0x28] sm:$0xff] %vm342_vm0, %v1236_v29 }
 0x198   : > { %v1331_v31 = vld [vmem:[#allocation2 + $0x31] sm:$0xff]  ;;  %1300 = vrot.lane.b32.xlu1 %v1283_v30, %s2120_s26  ;;  %1069 = vst.msk [vmem:[#allocation3 + $0x48] sm:$0xff] %vm342_vm0, %v1283_v30 }
 0x199   : > { %1228 = vst.msk [vmem:[#allocation3 + $0x38] sm:$0xff] %vm342_vm0, %v1331_v31 }
 0x19a   : > { %v1284_v33 = vld [vmem:[#allocation2 + $0x40] sm:$0xff] }
 0x19b   : > { %v1332_v34 = vld [vmem:[#allocation2 + $0x41] sm:$0xff]  ;;  %1190 = vrot.lane.b32.xlu0 %v1283_v30, %s2121_s29  ;;  %1070 = vst.msk [vmem:[#allocation3 + $0x60] sm:$0xff] %vm342_vm0, %v1284_v33 }
 0x19c   : > { %v1237_v35 = vld [vmem:[#allocation2 + $0x42] sm:$0xff]  ;;  %1348 = vrot.lane.b32.xlu1 %v1331_v31, %s2121_s29  ;;  %1229 = vst.msk [vmem:[#allocation3 + $0x50] sm:$0xff] %vm342_vm0, %v1332_v34  ;;  %v1967_v36 = vpop.f32.mrf.mxu0 }
 0x19d   : > { %1388 = vst.msk [vmem:[#allocation3 + $0x40] sm:$0xff] %vm342_vm0, %v1237_v35 }
 0x19e   : > { %v1968_v39 = vpop.f32.mrf.mxu0  ;;  %v1399_v41 = vld [vmem:[#allocation3 + $0x28] sm:$0xff] }
 0x19f   : > { %v1969_v16 = vadd.f32 %v1968_v39, %v1967_v36  ;;  %1302 = vrot.lane.b32.xlu0 %v1284_v33, %s2120_s26  ;;  %v1420_v42 = vpack.c.bf16 %v1399_v41, %v1396_v40 }
 0x1a0   : > { %1096 = vrot.lane.b32.xlu1 %v1331_v31, %s2119_s25  ;;  %v1970_v43 = vpop.f32.mrf.mxu0  ;;  %v2690_v31 = vpop.permute.xlu1 %1312 }
 0x1a1   : > { %v963_v44 = vadd.f32 %v1969_v16, %v2547_v38  ;;  %2047 = vmatprep.mubr.msk.bf16.mxu0 %vm342_vm0, %v1420_v42 }
 0x1a2   : > { %v1971_v46 = vpop.f32.mrf.mxu0 }
 0x1a3   : > { %v1028_v47 = vadd.f32 %v1027_v37, %v963_v44  ;;  %v1972_v48 = vadd.f32 %v1971_v46, %v1970_v43  ;;  %1350 = vrot.lane.b32.xlu0 %v1332_v34, %s2121_s29 }
 0x1a4   : > { %1144 = vrot.lane.b32.xlu1 %v1236_v29, %s2120_s26  ;;  %v1402_v62 = vld [vmem:[#allocation3 + $0x40] sm:$0xff] }
 0x1a5   : > { %v1046_v49 = vmax.f32 %v1028_v47, 0.0  ;;  %v966_v50 = vadd.f32 %v1972_v48, %v2547_v38 }
 0x1a7   : > { %1054 = vst.msk [vmem:[#allocation2 + $0x51] sm:$0xff] %vm342_vm0, %v1046_v49  ;;  %v1031_v52 = vadd.f32 %v1030_v51, %v966_v50  ;;  %1098 = vrot.lane.b32.xlu0 %v1332_v34, %s2119_s25 }
 0x1a8   : > { %1256 = vrot.lane.b32.xlu1 %v1237_v35, %s2119_s25 }
 0x1a9   : > { %v1047_v53 = vmax.f32 %v1031_v52, 0.0 }
 0x1ab   : > { %1055 = vst.msk [vmem:[#allocation2 + $0x61] sm:$0xff] %vm342_vm0, %v1047_v53  ;;  %1146 = vrot.lane.b32.xlu0 %v1237_v35, %s2120_s26 }
 0x1ac   : > { %1192 = vrot.lane.b32.xlu1 %v1284_v33, %s2121_s29 }
 0x1ae   : > { %v1238_v54 = vld [vmem:[#allocation2 + $0x52] sm:$0xff] }
 0x1af   : > { %v1285_v55 = vld [vmem:[#allocation2 + $0x50] sm:$0xff]  ;;  %1258 = vrot.lane.b32.xlu0 %v1238_v54, %s2119_s25  ;;  %1389 = vst.msk [vmem:[#allocation3 + $0x58] sm:$0xff] %vm342_vm0, %v1238_v54 }
 0x1b0   : > { %v1333_v56 = vld [vmem:[#allocation2 + $0x51] sm:$0xff]  ;;  %1304 = vrot.lane.b32.xlu1 %v1285_v55, %s2120_s26  ;;  %1071 = vst.msk [vmem:[#allocation3 + $0x78] sm:$0xff] %vm342_vm0, %v1285_v55 }
 0x1b1   : > { %1230 = vst.msk [vmem:[#allocation3 + $0x68] sm:$0xff] %vm342_vm0, %v1333_v56 }
 0x1b2   : > { %v1286_v57 = vld [vmem:[#allocation2 + $0x60] sm:$0xff] }
 0x1b3   : > { %v1334_v58 = vld [vmem:[#allocation2 + $0x61] sm:$0xff]  ;;  %1194 = vrot.lane.b32.xlu0 %v1285_v55, %s2121_s29  ;;  %1072 = vst.msk [vmem:[#allocation3 + $0x90] sm:$0xff] %vm342_vm0, %v1286_v57 }
 0x1b4   : > { %v1239_v59 = vld [vmem:[#allocation2 + $0x62] sm:$0xff]  ;;  %1352 = vrot.lane.b32.xlu1 %v1333_v56, %s2121_s29  ;;  %1231 = vst.msk [vmem:[#allocation3 + $0x80] sm:$0xff] %vm342_vm0, %v1334_v58  ;;  %v1973_v60 = vpop.f32.mrf.mxu0 }
 0x1b5   : > { %1390 = vst.msk [vmem:[#allocation3 + $0x70] sm:$0xff] %vm342_vm0, %v1239_v59 }
 0x1b6   : > { %v1974_v61 = vpop.f32.mrf.mxu0  ;;  %v1405_v63 = vld [vmem:[#allocation3 + $0x58] sm:$0xff] }
 0x1b7   : > { %v1975_v0 = vadd.f32 %v1974_v61, %v1973_v60  ;;  %1306 = vrot.lane.b32.xlu0 %v1286_v57, %s2120_s26  ;;  %v1423_v1 = vpack.c.bf16 %v1405_v63, %v1402_v62 }
 0x1b8   : > { %1100 = vrot.lane.b32.xlu1 %v1333_v56, %s2119_s25  ;;  %v1976_v2 = vpop.f32.mrf.mxu0 }
 0x1b9   : > { %v971_v3 = vadd.f32 %v1975_v0, %v2547_v38  ;;  %2048 = vmatmul.mubr.msk.bf16.vlgmr.msra.gmra.mxu0 %vm342_vm0, %v1423_v1 }
 0x1ba   : > { %v1977_v4 = vpop.f32.mrf.mxu0 }
 0x1bb   : > { %v1036_v5 = vadd.f32 %v2629_v32, %v971_v3  ;;  %v1978_v17 = vadd.f32 %v1977_v4, %v1976_v2  ;;  %1354 = vrot.lane.b32.xlu0 %v1334_v58, %s2121_s29  ;;  %v2692_v32 = vpop.permute.xlu1 %1360 }
 0x1bc   : > { %1148 = vrot.lane.b32.xlu1 %v1238_v54, %s2120_s26  ;;  %v1408_v25 = vld [vmem:[#allocation3 + $0x70] sm:$0xff] }
 0x1bd   : > { %v1048_v18 = vmax.f32 %v1036_v5, 0.0  ;;  %v974_v19 = vadd.f32 %v1978_v17, %v2547_v38 }
 0x1bf   : > { %1056 = vst.msk [vmem:[#allocation2 + $0x71] sm:$0xff] %vm342_vm0, %v1048_v18  ;;  %v1039_v9 = vadd.f32 %v2042_v45, %v974_v19  ;;  %1102 = vrot.lane.b32.xlu0 %v1334_v58, %s2119_s25 }
 0x1c0   : > { %1260 = vrot.lane.b32.xlu1 %v1239_v59, %s2119_s25 }
 0x1c1   : > { %v1049_v20 = vmax.f32 %v1039_v9, 0.0 }
 0x1c3   : > { %1057 = vst.msk [vmem:[#allocation2 + $0x81] sm:$0xff] %vm342_vm0, %v1049_v20  ;;  %1150 = vrot.lane.b32.xlu0 %v1239_v59, %s2120_s26 }
 0x1c4   : > { %1196 = vrot.lane.b32.xlu1 %v1286_v57, %s2121_s29 }
 0x1c6   : > { %v1240_v10 = vld [vmem:[#allocation2 + $0x72] sm:$0xff] }
 0x1c7   : > { %v1287_v21 = vld [vmem:[#allocation2 + $0x70] sm:$0xff]  ;;  %1262 = vrot.lane.b32.xlu0 %v1240_v10, %s2119_s25  ;;  %1391 = vst.msk [vmem:[#allocation3 + $0x88] sm:$0xff] %vm342_vm0, %v1240_v10 }
 0x1c8   : > { %v1335_v22 = vld [vmem:[#allocation2 + $0x71] sm:$0xff]  ;;  %1308 = vrot.lane.b32.xlu1 %v1287_v21, %s2120_s26  ;;  %1073 = vst.msk [vmem:[#allocation3 + $0xa8] sm:$0xff] %vm342_vm0, %v1287_v21 }
 0x1c9   : > { %1232 = vst.msk [vmem:[#allocation3 + $0x98] sm:$0xff] %vm342_vm0, %v1335_v22 }
 0x1ca   : > { %v1288_v38 = vld [vmem:[#allocation2 + $0x80] sm:$0xff] }
 0x1cb   : > { %v1336_v23 = vld [vmem:[#allocation2 + $0x81] sm:$0xff]  ;;  %1310 = vrot.lane.b32.xlu0 %v1288_v38, %s2120_s26 }
 0x1cc   : > { %v1384_v24 = vld [vmem:[#allocation2 + $0x82] sm:$0xff]  ;;  %1356 = vrot.lane.b32.xlu1 %v1335_v22, %s2121_s29  ;;  %1233 = vst.msk [vmem:[#allocation3 + $0xb0] sm:$0xff] %vm342_vm0, %v1336_v23 }
 0x1cd   : > { %1392 = vst.msk [vmem:[#allocation3 + $0xa0] sm:$0xff] %vm342_vm0, %v1384_v24 }
 0x1ce   : > { %v1411_v26 = vld [vmem:[#allocation3 + $0x88] sm:$0xff] }
 0x1cf   : > { %1358 = vrot.lane.b32.xlu0 %v1336_v23, %s2121_s29  ;;  %v1426_v27 = vpack.c.bf16 %v1411_v26, %v1408_v25 }
 0x1d0   : > { %1104 = vrot.lane.b32.xlu1 %v1335_v22, %s2119_s25 }
 0x1d1   : > { %2051 = vmatprep.mubr.msk.bf16.mxu0 %vm342_vm0, %v1426_v27 }
 0x1d3   : > { %1198 = vrot.lane.b32.xlu0 %v1287_v21, %s2121_s29 }
 0x1d4   : > { %v1414_v29 = vld [vmem:[#allocation3 + $0xa0] sm:$0xff]  ;;  %1152 = vrot.lane.b32.xlu1 %v1240_v10, %s2120_s26 }
 0x1d5   : > { %v1429_v30 = vpack.c.bf16 %v1417_v28, %v1414_v29 }
 0x1d7   : > { %2052 = vmatmul.mubr.msk.bf16.gmra.mxu0 %vm342_vm0, %v1429_v30 }
 0x1d8   : > { %1264 = vrot.lane.b32.xlu1 %v1384_v24, %s2119_s25 }
 0x1dc   : > { %1200 = vrot.lane.b32.xlu1 %v1288_v38, %s2121_s29 }
 0x1f1   : > { %v1251_v33 = vpop.permute.xlu0 %1250 }
 0x1f2   : > { %v1093_v34 = vpop.permute.xlu1 %1092  ;;  %1274 = vst.msk [vmem:[#allocation3 + $0x8] sm:$0xff] %vm429_vm2, %v1251_v33 }
 0x1f3   : > { %1115 = vst.msk [vmem:[#allocation3 + $0x18] sm:$0xff] %vm429_vm2, %v1093_v34 }
 0x1f5   : > { %v1187_v35 = vpop.permute.xlu0 %1186 }
 0x1f6   : > { %v1141_v36 = vpop.permute.xlu1 %1140  ;;  %1210 = vst.msk [vmem:[#allocation3] sm:$0xff] %vm527_vm4, %v1187_v35 }
 0x1f7   : > { %1163 = vst.msk [vmem:[#allocation3 + $0x18] sm:$0xff] %vm478_vm3, %v1141_v36 }
 0x1f9   : > { %v1299_v37 = vpop.permute.xlu0 %1298 }
 0x1fa   : > { %v1253_v39 = vpop.permute.xlu1 %1252  ;;  %1322 = vst.msk [vmem:[#allocation3 + $0x8] sm:$0xff] %vm478_vm3, %v1299_v37 }
 0x1fb   : > { %1275 = vst.msk [vmem:[#allocation3 + $0x20] sm:$0xff] %vm429_vm2, %v1253_v39 }
 0x1fd   : > { %v1347_v40 = vpop.permute.xlu0 %1346  ;;  %v1394_v55 = vld [vmem:[#allocation3] sm:$0xff] }
 0x1fe   : > { %v1189_v41 = vpop.permute.xlu1 %1188  ;;  %1370 = vst.msk [vmem:[#allocation3 + $0x8] sm:$0xff] %vm527_vm4, %v1347_v40 }
 0x1ff   : > { %1211 = vst.msk [vmem:[#allocation3 + $0x18] sm:$0xff] %vm527_vm4, %v1189_v41 }
 0x201   : > { %v1095_v16 = vpop.permute.xlu0 %1094 }
 0x202   : > { %1116 = vst.msk [vmem:[#allocation3 + $0x30] sm:$0xff] %vm429_vm2, %v1095_v16 }
 0x205   : > { %v1143_v42 = vpop.permute.xlu0 %1142  ;;  %v1395_v52 = vld [vmem:[#allocation3 + $0x8] sm:$0xff] }
 0x206   : > { %1164 = vst.msk [vmem:[#allocation3 + $0x30] sm:$0xff] %vm478_vm3, %v1143_v42  ;;  %v1397_v49 = vld [vmem:[#allocation3 + $0x18] sm:$0xff] }
 0x207   : > { %v1418_v56 = vpack.c.bf16 %v1397_v49, %v1394_v55 }
 0x209   : > { %v1255_v43 = vpop.permute.xlu0 %1254 }
 0x20a   : > { %v1301_v44 = vpop.permute.xlu1 %1300  ;;  %1276 = vst.msk [vmem:[#allocation3 + $0x38] sm:$0xff] %vm429_vm2, %v1255_v43 }
 0x20b   : > { %1323 = vst.msk [vmem:[#allocation3 + $0x20] sm:$0xff] %vm478_vm3, %v1301_v44 }
 0x20d   : > { %v1191_v45 = vpop.permute.xlu0 %1190 }
 0x20e   : > { %v1349_v46 = vpop.permute.xlu1 %1348  ;;  %1212 = vst.msk [vmem:[#allocation3 + $0x30] sm:$0xff] %vm527_vm4, %v1191_v45 }
 0x20f   : > { %1371 = vst.msk [vmem:[#allocation3 + $0x20] sm:$0xff] %vm527_vm4, %v1349_v46 }
 0x211   : > { %v1303_v47 = vpop.permute.xlu0 %1302 }
 0x212   : > { %v1097_v48 = vpop.permute.xlu1 %1096  ;;  %1324 = vst.msk [vmem:[#allocation3 + $0x38] sm:$0xff] %vm478_vm3, %v1303_v47 }
 0x213   : > { %1117 = vst.msk [vmem:[#allocation3 + $0x48] sm:$0xff] %vm429_vm2, %v1097_v48 }
 0x215   : > { %v1351_v50 = vpop.permute.xlu0 %1350  ;;  %v1400_v9 = vld [vmem:[#allocation3 + $0x30] sm:$0xff] }
 0x216   : > { %v1145_v51 = vpop.permute.xlu1 %1144  ;;  %v1398_v53 = vld [vmem:[#allocation3 + $0x20] sm:$0xff]  ;;  %1372 = vst.msk [vmem:[#allocation3 + $0x38] sm:$0xff] %vm527_vm4, %v1351_v50 }
 0x217   : > { %1165 = vst.msk [vmem:[#allocation3 + $0x48] sm:$0xff] %vm478_vm3, %v1145_v51  ;;  %v1419_v54 = vpack.c.bf16 %v1398_v53, %v1395_v52 }
 0x219   : > { %1618 = vmatprep.mubr.bf16.mxu1 %v1419_v54  ;;  %v1099_v57 = vpop.permute.xlu0 %1098 }
 0x21a   : > { %v1257_v58 = vpop.permute.xlu1 %1256  ;;  %1619 = vmatmul.mubr.bf16.vlgmr.msra.gmra.mxu1 %v1418_v56  ;;  %1118 = vst.msk [vmem:[#allocation3 + $0x60] sm:$0xff] %vm429_vm2, %v1099_v57 }
 0x21b   : > { %1277 = vst.msk [vmem:[#allocation3 + $0x50] sm:$0xff] %vm429_vm2, %v1257_v58 }
 0x21d   : > { %v1147_v59 = vpop.permute.xlu0 %1146  ;;  %v1401_v17 = vld [vmem:[#allocation3 + $0x38] sm:$0xff] }
 0x21e   : > { %v1193_v60 = vpop.permute.xlu1 %1192  ;;  %1166 = vst.msk [vmem:[#allocation3 + $0x60] sm:$0xff] %vm478_vm3, %v1147_v59 }
 0x21f   : > { %1213 = vst.msk [vmem:[#allocation3 + $0x48] sm:$0xff] %vm527_vm4, %v1193_v60 }
 0x221   : > { %v1259_v61 = vpop.permute.xlu0 %1258 }
 0x222   : > { %v1305_v62 = vpop.permute.xlu1 %1304  ;;  %1278 = vst.msk [vmem:[#allocation3 + $0x68] sm:$0xff] %vm429_vm2, %v1259_v61 }
 0x223   : > { %1325 = vst.msk [vmem:[#allocation3 + $0x50] sm:$0xff] %vm478_vm3, %v1305_v62 }
 0x225   : > { %v1195_v63 = vpop.permute.xlu0 %1194 }
 0x226   : > { %v1353_v0 = vpop.permute.xlu1 %1352  ;;  %1214 = vst.msk [vmem:[#allocation3 + $0x60] sm:$0xff] %vm527_vm4, %v1195_v63  ;;  %v1403_v3 = vld [vmem:[#allocation3 + $0x48] sm:$0xff] }
 0x227   : > { %1373 = vst.msk [vmem:[#allocation3 + $0x50] sm:$0xff] %vm527_vm4, %v1353_v0  ;;  %v1421_v20 = vpack.c.bf16 %v1403_v3, %v1400_v9 }
 0x229   : > { %v1307_v1 = vpop.permute.xlu0 %1306 }
 0x22a   : > { %v1101_v2 = vpop.permute.xlu1 %1100  ;;  %1326 = vst.msk [vmem:[#allocation3 + $0x68] sm:$0xff] %vm478_vm3, %v1307_v1 }
 0x22b   : > { %1119 = vst.msk [vmem:[#allocation3 + $0x78] sm:$0xff] %vm429_vm2, %v1101_v2 }
 0x22d   : > { %v1355_v4 = vpop.permute.xlu0 %1354  ;;  %v1406_v37 = vld [vmem:[#allocation3 + $0x60] sm:$0xff] }
 0x22e   : > { %v1149_v5 = vpop.permute.xlu1 %1148  ;;  %v1404_v18 = vld [vmem:[#allocation3 + $0x50] sm:$0xff]  ;;  %1374 = vst.msk [vmem:[#allocation3 + $0x68] sm:$0xff] %vm527_vm4, %v1355_v4 }
 0x22f   : > { %1167 = vst.msk [vmem:[#allocation3 + $0x78] sm:$0xff] %vm478_vm3, %v1149_v5  ;;  %v1422_v19 = vpack.c.bf16 %v1404_v18, %v1401_v17 }
 0x231   : > { %1626 = vmatprep.mubr.bf16.mxu1 %v1422_v19  ;;  %v1103_v10 = vpop.permute.xlu0 %1102 }
 0x232   : > { %v1261_v21 = vpop.permute.xlu1 %1260  ;;  %1627 = vmatmul.mubr.bf16.gmra.mxu1 %v1421_v20  ;;  %1120 = vst.msk [vmem:[#allocation3 + $0x90] sm:$0xff] %vm429_vm2, %v1103_v10 }
 0x233   : > { %1279 = vst.msk [vmem:[#allocation3 + $0x80] sm:$0xff] %vm429_vm2, %v1261_v21 }
 0x235   : > { %v1151_v22 = vpop.permute.xlu0 %1150  ;;  %v1407_v34 = vld [vmem:[#allocation3 + $0x68] sm:$0xff] }
 0x236   : > { %v1197_v38 = vpop.permute.xlu1 %1196  ;;  %1168 = vst.msk [vmem:[#allocation3 + $0x90] sm:$0xff] %vm478_vm3, %v1151_v22 }
 0x237   : > { %1215 = vst.msk [vmem:[#allocation3 + $0x78] sm:$0xff] %vm527_vm4, %v1197_v38 }
 0x239   : > { %v1263_v23 = vpop.permute.xlu0 %1262 }
 0x23a   : > { %v1309_v24 = vpop.permute.xlu1 %1308  ;;  %1280 = vst.msk [vmem:[#allocation3 + $0x98] sm:$0xff] %vm429_vm2, %v1263_v23 }
 0x23b   : > { %1327 = vst.msk [vmem:[#allocation3 + $0x80] sm:$0xff] %vm478_vm3, %v1309_v24 }
 0x23d   : > { %v1311_v25 = vpop.permute.xlu0 %1310 }
 0x23e   : > { %v1357_v26 = vpop.permute.xlu1 %1356  ;;  %1328 = vst.msk [vmem:[#allocation3 + $0x98] sm:$0xff] %vm478_vm3, %v1311_v25  ;;  %v1409_v29 = vld [vmem:[#allocation3 + $0x78] sm:$0xff] }
 0x23f   : > { %1375 = vst.msk [vmem:[#allocation3 + $0x80] sm:$0xff] %vm527_vm4, %v1357_v26  ;;  %v1424_v39 = vpack.c.bf16 %v1409_v29, %v1406_v37 }
 0x241   : > { %v1359_v27 = vpop.permute.xlu0 %1358 }
 0x242   : > { %v1105_v28 = vpop.permute.xlu1 %1104  ;;  %1376 = vst.msk [vmem:[#allocation3 + $0x98] sm:$0xff] %vm527_vm4, %v1359_v27 }
 0x243   : > { %1121 = vst.msk [vmem:[#allocation3 + $0xa8] sm:$0xff] %vm429_vm2, %v1105_v28 }
 0x245   : > { %v1199_v30 = vpop.permute.xlu0 %1198 }
 0x246   : > { %v1153_v33 = vpop.permute.xlu1 %1152  ;;  %v1410_v35 = vld [vmem:[#allocation3 + $0x80] sm:$0xff]  ;;  %1216 = vst.msk [vmem:[#allocation3 + $0x90] sm:$0xff] %vm527_vm4, %v1199_v30 }
 0x247   : > { %1169 = vst.msk [vmem:[#allocation3 + $0xa8] sm:$0xff] %vm478_vm3, %v1153_v33  ;;  %v1425_v36 = vpack.c.bf16 %v1410_v35, %v1407_v34 }
 0x249   : > { %1634 = vmatprep.mubr.bf16.mxu1 %v1425_v36  ;;  %v1413_v16 = vld [vmem:[#allocation3 + $0x98] sm:$0xff] }
 0x24a   : > { %v1265_v40 = vpop.permute.xlu1 %1264  ;;  %1635 = vmatmul.mubr.bf16.gmra.mxu1 %v1424_v39 }
 0x24b   : > { %1281 = vst.msk [vmem:[#allocation3 + $0xb0] sm:$0xff] %vm429_vm2, %v1265_v40 }
 0x24c   : > { %1329 = vst.msk [vmem:[#allocation3 + $0xb0] sm:$0xff] %vm478_vm3, %v2690_v31 }
 0x24d   : > { %1377 = vst.msk [vmem:[#allocation3 + $0xb0] sm:$0xff] %vm527_vm4, %v2692_v32  ;;  %v1412_v44 = vld [vmem:[#allocation3 + $0x90] sm:$0xff] }
 0x24e   : > { %v1201_v41 = vpop.permute.xlu1 %1200 }
 0x24f   : > { %1217 = vst.msk [vmem:[#allocation3 + $0xa8] sm:$0xff] %vm527_vm4, %v1201_v41 }
 0x254   : > { %v1416_v42 = vld [vmem:[#allocation3 + $0xb0] sm:$0xff] }
 0x255   : > { %v1428_v43 = vpack.c.bf16 %v1416_v42, %v1413_v16 }
 0x256   : > { %v1415_v45 = vld [vmem:[#allocation3 + $0xa8] sm:$0xff] }
 0x257   : > { %1642 = vmatprep.mubr.bf16.mxu1 %v1428_v43  ;;  %v1427_v46 = vpack.c.bf16 %v1415_v45, %v1412_v44 }
 0x259   : > { %1643 = vmatmul.mubr.bf16.gmra.mxu1 %v1427_v46 }
 0x279   : > { %v2049_v31 = vpop.f32.mrf.mxu0 }
 0x27b   : > { %v1685_v53 = vpop.f32.mrf.mxu0 }
 0x27d   : > { %v2050_v54 = vpop.f32.mrf.mxu0 }
 0x27f   : > { %v1688_v57 = vpop.f32.mrf.mxu0 }
 0x297   : > { %v2053_v59 = vpop.f32.mrf.mxu0 }
 0x299   : > { %v1701_v0 = vpop.f32.mrf.mxu0 }
 0x29b   : > { %v2054_v18 = vpop.f32.mrf.mxu0 }
 0x29d   : > { %v1704_v38 = vpop.f32.mrf.mxu0 }
 0x2da   : > { %v2001_v47 = vpop.f32.mrf.mxu1 }
 0x2dc   : > { %v2002_v48 = vpop.f32.mrf.mxu1 }
 0x2dd   : > { %v2003_v62 = vadd.f32 %v2002_v48, %v2001_v47 }
 0x2de   : > { %v2004_v49 = vpop.f32.mrf.mxu1 }
 0x2df   : > { %v2744_v4 = vadd.f32 %v2003_v62, %v1685_v53 }
 0x2e0   : > { %v2005_v50 = vpop.f32.mrf.mxu1 }
 0x2e1   : > { %v2006_v60 = vadd.f32 %v2005_v50, %v2004_v49  ;;  %v1716_v10 = vsel %vm342_vm0, %v2744_v4, 0.0  ;;  %v1742_v49 = vlaneseq }
 0x2e3   : > { %v2742_v1 = vadd.f32 %v2006_v60, %v1688_v57  ;;  %v2122_v60 = vmov 0  }
 0x2e4   : > { %2068 = vset.pattern.permute.xlu1 %v2122_v60  ;;  %2069 = vset.pattern.permute.xlu0 %v2122_v60 }
 0x2e5   : > { %v1717_v19 = vsel %vm342_vm0, %v2742_v1, 0.0 }
 0x2e6   : > { %v1718_v23 = vadd.f32 %v1717_v19, %v1716_v10 }
 0x2f2   : > { %v2007_v51 = vpop.f32.mrf.mxu1 }
 0x2f4   : > { %v2008_v52 = vpop.f32.mrf.mxu1 }
 0x2f5   : > { %v2009_v63 = vadd.f32 %v2008_v52, %v2007_v51 }
 0x2f6   : > { %v2010_v32 = vpop.f32.mrf.mxu1 }
 0x2f7   : > { %v2746_v5 = vadd.f32 %v2049_v31, %v2009_v63  ;;  %v1743_v31 = vshrl.u32 %v1742_v49, 7 }
 0x2f8   : > { %v2011_v55 = vpop.f32.mrf.mxu1 }
 0x2f9   : > { %v2012_v2 = vadd.f32 %v2011_v55, %v2010_v32  ;;  %v1719_v21 = vsel %vm342_vm0, %v2746_v5, 0.0  ;;  %v1739_v32 = vld [vmem:[%s2819_s4] sm:$0x1] }
 0x2fa   : > { %v1720_v27 = vadd.f32 %v1719_v21, %v1718_v23  ;;  %v1767_v23 = vld [vmem:[%s2823_s8] sm:$0x1] }
 0x2fb   : > { %v2750_v9 = vadd.f32 %v2050_v54, %v2012_v2  ;;  %v1744_v54 = vsub.s32 0, %v1743_v31  ;;  %v1753_v2 = vld [vmem:[%s2822_s7] sm:$0x3] }
 0x2fd   : > { %v1721_v25 = vsel %vm342_vm0, %v2750_v9, 0.0 }
 0x2fe   : > { %v1722_v33 = vadd.f32 %v1721_v25, %v1720_v27 }
 0x30a   : > { %v2013_v56 = vpop.f32.mrf.mxu1 }
 0x30c   : > { %v2014_v58 = vpop.f32.mrf.mxu1 }
 0x30d   : > { %v2015_v17 = vadd.f32 %v2014_v58, %v2013_v56  ;;  %v1741_v56 = vld [vmem:[%s2820_s5] sm:$0x3] }
 0x30e   : > { %v2016_v61 = vpop.f32.mrf.mxu1 }
 0x30f   : > { %v2756_v22 = vadd.f32 %v2015_v17, %v1701_v0 }
 0x310   : > { %v2017_v3 = vpop.f32.mrf.mxu1 }
 0x311   : > { %v2018_v20 = vadd.f32 %v2017_v3, %v2016_v61  ;;  %v1723_v29 = vsel %vm342_vm0, %v2756_v22, 0.0  ;;  %v1750_v61 = vld [vmem:[%s2821_s6] sm:$0x3] }
 0x312   : > { %v1724_v37 = vadd.f32 %v1723_v29, %v1722_v33 }
 0x313   : > { %v2760_v26 = vadd.f32 %v2018_v20, %v1704_v38 }
 0x315   : > { %v1725_v35 = vsel %vm342_vm0, %v2760_v26, 0.0 }
 0x316   : > { %v1726_v16 = vadd.f32 %v1725_v35, %v1724_v37 }
 0x319   : > { %v2019_v24 = vpop.f32.mrf.mxu1 }
 0x31b   : > { %v2020_v28 = vpop.f32.mrf.mxu1 }
 0x31c   : > { %v2021_v30 = vadd.f32 %v2020_v28, %v2019_v24 }
 0x31d   : > { %v2022_v34 = vpop.f32.mrf.mxu1 }
 0x31e   : > { %v1710_v36 = vadd.f32 %v2053_v59, %v2021_v30  ;;  %v1779_v30 = vrot.slane %v1739_v32, %v1744_v54 }
 0x31f   : > { %v2023_v39 = vpop.f32.mrf.mxu1 }
 0x320   : > { %v1727_v40 = vsel %vm342_vm0, %v1710_v36, 0.0  ;;  %v2024_v41 = vadd.f32 %v2023_v39, %v2022_v34  ;;  %v1781_v34 = vadd.f32 %v1779_v30, %v2744_v4  ;;  %v1782_v35 = vadd.f32 %v1779_v30, %v2742_v1 }
 0x321   : > { %v1728_v43 = vadd.f32 %v1727_v40, %v1726_v16  ;;  %v1783_v37 = vadd.f32 %v1779_v30, %v2746_v5  ;;  %v1784_v39 = vadd.f32 %v1779_v30, %v2750_v9  ;;  %v1786_v16 = vadd.f32 %v1779_v30, %v2760_v26 }
 0x322   : > { %v1713_v42 = vadd.f32 %v2054_v18, %v2024_v41  ;;  %v1785_v41 = vadd.f32 %v1779_v30, %v2756_v22 }
 0x324   : > { %v1729_v44 = vsel %vm342_vm0, %v1713_v42, 0.0 }
 0x325   : > { %v1730_v45 = vadd.f32 %v1729_v44, %v1728_v43  ;;  %v1787_v43 = vadd.f32 %v1779_v30, %v1710_v36  ;;  %v1788_v44 = vadd.f32 %v1779_v30, %v1713_v42 }
 0x327   : > { %v1731_v46 = vrot.slane %v1730_v45, 4 }
 0x329   : > { %v1732_v47 = vadd.f32 %v1731_v46, %v1730_v45 }
 0x32b   : > { %v1733_v48 = vrot.slane %v1732_v47, 2 }
 0x32d   : > { %v1734_v50 = vadd.f32 %v1733_v48, %v1732_v47 }
 0x32f   : > { %v1735_v51 = vrot.slane %v1734_v50, 1 }
 0x331   : > { %v1736_v52 = vadd.f32 %v1735_v51, %v1734_v50 }
 0x333   : > { %v1738_v53 = vmul.f32 0.015625, %v1736_v52 }
 0x335   : > { %v1740_v55 = vadd.f32 %v1739_v32, %v1738_v53 }
 0x337   : > { %v1745_v57 = vrot.slane %v1740_v55, %v1744_v54 }
 0x339   : > { %v1746_v58 = vmul.f32 %v1745_v57, %v1741_v56 }
 0x33b   : > { %v1747_v59 = vsel %vm344_vm1, %v1746_v58, 0.0 }
 0x33c   : > { %1748 = vadd.xlane.f32.xlu0 %v1747_v59 }
 0x3c5   : > { %v1749_v62 = vpop.xlane.xlu0 %1748 }
 0x3c6   : > { %v1751_v63 = vadd.f32 %v1750_v61, %v1749_v62 }
 0x3c8   : > { %v1752_v0 = vmax.f32 %v1751_v63, 0.0 }
 0x3ca   : > { %1756 = vperm.xlu1 %2068, %v1752_v0  }
 0x445   : > { %v1757_v3 = vpop.permute.xlu1 %1756 }
 0x446   : > { %v1759_v17 = vmul.f32 %v1757_v3, %v1753_v2 }
 0x448   : > { %v1760_v18 = vsel %vm344_vm1, %v1759_v17, 0.0 }
 0x449   : > { %v1761_v19 = vrot.slane %v1760_v18, 4 }
 0x44b   : > { %v1762_v20 = vadd.f32 %v1761_v19, %v1760_v18 }
 0x44d   : > { %v1763_v10 = vrot.slane %v1762_v20, 2 }
 0x44f   : > { %v1764_v21 = vadd.f32 %v1763_v10, %v1762_v20 }
 0x451   : > { %v1765_v38 = vrot.slane %v1764_v21, 1 }
 0x453   : > { %v1766_v24 = vadd.f32 %v1765_v38, %v1764_v21 }
 0x455   : > { %v1768_v25 = vadd.f32 %v1767_v23, %v1766_v24 }
 0x457   : > { %v1934_v27 = vmul.f32 -1.442695, %v1768_v25 }
 0x459   : > { %2106 = vpow2.f32 %v1934_v27 }
 0x466   : > { %v2107_v28 = vpop.eup %2106 }
 0x467   : > { %v1772_v29 = vadd.f32 1.0, %v2107_v28 }
 0x469   : > { %2108 = vrcp.f32 %v1772_v29 }
 0x476   : > { %v2109_v33 = vpop.eup %2108 }
 0x477   : > { %v1792_v40 = vrot.slane %v2109_v33, %v1744_v54 }
 0x479   : > { %v1793_v45 = vmul.f32 %v1792_v40, %v1781_v34  ;;  %v1794_v46 = vmul.f32 %v1792_v40, %v1782_v35  ;;  %v1795_v47 = vmul.f32 %v1792_v40, %v1783_v37  ;;  %v1796_v48 = vmul.f32 %v1792_v40, %v1784_v39 }
 0x47a   : > { %v1797_v49 = vmul.f32 %v1792_v40, %v1785_v41  ;;  %v1798_v4 = vmul.f32 %v1792_v40, %v1786_v16  ;;  %v1799_v50 = vmul.f32 %v1792_v40, %v1787_v43  ;;  %v1800_v1 = vmul.f32 %v1792_v40, %v1788_v44 }
 0x47b   : > { %v1801_v5 = vadd.f32 %v1793_v45, %v2228_v6  ;;  %v1802_v9 = vadd.f32 %v1794_v46, %v2230_v7  ;;  %v1803_v51 = vadd.f32 %v1795_v47, %v2232_v8  ;;  %v1804_v22 = vadd.f32 %v1796_v48, %v2244_v11 }
 0x47c   : > { %v1805_v26 = vadd.f32 %v1797_v49, %v2252_v12  ;;  %v1806_v36 = vadd.f32 %v1798_v4, %v2254_v13  ;;  %v1807_v42 = vadd.f32 %v1799_v50, %v2260_v14  ;;  %v1808_v31 = vadd.f32 %v1800_v1, %v2262_v15 }
 0x47d   : > { %v1809_v6 = vmax.f32 %v1801_v5, 0.0  ;;  %v1810_v52 = vmax.f32 %v1802_v9, 0.0  ;;  %v1811_v7 = vmax.f32 %v1803_v51, 0.0  ;;  %v1812_v53 = vmax.f32 %v1804_v22, 0.0 }
 0x47e   : > { %v1813_v8 = vmax.f32 %v1805_v26, 0.0  ;;  %v1814_v32 = vmax.f32 %v1806_v36, 0.0  ;;  %v1815_v11 = vmax.f32 %v1807_v42, 0.0  ;;  %v1816_v54 = vmax.f32 %v1808_v31, 0.0 }
 0x47f   : > { %1817 = vst.msk [vmem:[%s332_s22] sm:$0xff] %vm342_vm0, %v1809_v6  ;;  %1818 = vst.msk [vmem:[%s332_s22 + $0x8] sm:$0xff] %vm342_vm0, %v1810_v52 }
 0x480   : > { %1819 = vst.msk [vmem:[%s332_s22 + $0x10] sm:$0xff] %vm342_vm0, %v1811_v7  ;;  %1820 = vst.msk [vmem:[%s332_s22 + $0x18] sm:$0xff] %vm342_vm0, %v1812_v53 }
 0x481   : > { %1821 = vst.msk [vmem:[%s332_s22 + $0x20] sm:$0xff] %vm342_vm0, %v1813_v8  ;;  %1822 = vst.msk [vmem:[%s332_s22 + $0x28] sm:$0xff] %vm342_vm0, %v1814_v32 }
 0x482   : > { %1823 = vst.msk [vmem:[%s332_s22 + $0x30] sm:$0xff] %vm342_vm0, %v1815_v11  ;;  %1824 = vst.msk [vmem:[%s332_s22 + $0x38] sm:$0xff] %vm342_vm0, %v1816_v54 }
 0x483 PF: > { %s19_s30 = sadd.s32 1, %s2116_s30  }
 0x484   : > { %p16_p4 = scmp.ge.s32.totalorder %s19_s30, 4  }
 0x486   :  { %18 = sbr.rel (!%p16_p4) target bundleno = 1 (0x1), region = 88 }

</bundles_post_ra>
